<compile_context>
chip_gen: v6e
topology: v6e:2x2x1
jax: 0.10.0
libtpu: 0.0.40
codegen_flags: <defaults>
</compile_context>

<pallas_src>
import functools

import jax
import jax.numpy as jnp
from jax import lax
from jax.experimental import pallas as pl
from jax.experimental.pallas import tpu as pltpu


def basic_block_kernel(x_ref, mask_ref, w1_ref, bias1_ref, w2_ref, b2_ref,
                       s1_ref, o1_ref,
                       out_ref,
                       x1_ref, hpad_ref, x2_ref,
                       *, stride, ksize, pad, in_ch, out_ch, l_out,
                       zero_pad, apply_bn1, b_blk, mxu_dtype):
    s = stride
    C, F, L1 = in_ch, out_ch, l_out

    # Zero only the pad fringes of the conv2 input scratch (they stay zero for
    # the rest of the step; re-zeroed every grid step so "parallel" megacore
    # sharding is always safe).
    hpad_ref[:, 0:pad] = jnp.zeros((F, pad), mxu_dtype)
    hpad_ref[:, pad + L1:] = jnp.zeros((F, pad), mxu_dtype)

    p_q, p_r = divmod(pad, s)

    for b in range(b_blk):
        xb = x_ref[b]                                  # (s, C, Lq): raw padded phases

        # ---- shortcut = MaxPool1d(kernel_size=stride)(x)  (raw x, pre-bn1) ----
        sc = None
        for r in range(s):
            t = r + p_r
            off = p_q + t // s
            v = xb[t % s, :, off:off + L1]             # (C, L1), contiguous lane slice
            sc = v if sc is None else jnp.maximum(sc, v)

        # ---- bn1 + relu (idx_block != 0); mask keeps the conv zero-pad intact ----
        if apply_bn1:
            xa = jnp.maximum(xb * s1_ref[...][None] + o1_ref[...][None], 0.0)
            xa = xa * mask_ref[...]                    # zero out the length padding
        else:
            xa = xb

        # ---- conv1 (+ folded bias & bn2 scale): im2col slab -> ONE MXU matmul ----
        for k in range(ksize):
            q, r = divmod(k, s)
            x1_ref[k * C:(k + 1) * C, :] = xa[r, :, q:q + L1].astype(mxu_dtype)
        h = jnp.dot(w1_ref[...], x1_ref[...],
                    preferred_element_type=jnp.float32)           # (F, L1)
        h = jnp.maximum(h + bias1_ref[...], 0.0)                  # bn2 offset folded in
        # dropout: identity in inference mode.
        # TODO(synk): training-mode dropout would need pltpu.prng_seed/prng_random_bits.

        # ---- conv2 (stride 1): padded VMEM scratch + im2col slab -> ONE matmul ----
        hpad_ref[:, pad:pad + L1] = h.astype(mxu_dtype)
        for k in range(ksize):
            x2_ref[k * F:(k + 1) * F, :] = hpad_ref[:, k:k + L1]
        acc2 = jnp.dot(w2_ref[...], x2_ref[...],
                       preferred_element_type=jnp.float32)        # (F, L1)
        acc2 = acc2 + b2_ref[...]

        # ---- residual add (shortcut only feeds the first C channels when padded) ----
        if zero_pad:
            out_ref[b, 0:C, :] = (acc2[0:C, :] + sc).astype(out_ref.dtype)
            out_ref[b, C:F, :] = acc2[C:F, :].astype(out_ref.dtype)
        else:
            out_ref[b, :, :] = (acc2 + sc).astype(out_ref.dtype)


def basic_block_forward(x_ncl, params, *, stride, ksize, pad, idx_block, zero_pad,
                        mxu_dtype=jnp.float32, batch_block=8):
    N, C, L = x_ncl.shape
    F = params["w1"].shape[0]
    assert L % stride == 0
    L1 = (L + 2 * pad - ksize) // stride + 1
    assert L1 == L // stride
    if zero_pad:
        # torch.cat([shortcut, zeros_like(shortcut)], dim=1) => out needs 2*C channels.
        assert F == 2 * C
    else:
        assert F == C

    eps = 1e-5
    s1 = params["g1"] / jnp.sqrt(params["v1"] + eps)
    o1 = params["beta1"] - params["m1"] * s1
    s2 = params["g2"] / jnp.sqrt(params["v2"] + eps)
    o2 = params["beta2"] - params["m2"] * s2

    # Fold conv1 bias + bn2 affine into conv1's weights and a single offset.
    w1f = params["w1"] * s2[:, None, None]                               # (F, C, K)
    bias1 = (s2 * params["b1"] + o2).reshape(F, 1).astype(jnp.float32)
    # im2col weight matrices, column ordering (k, c) resp. (k, g).
    w1m = jnp.transpose(w1f, (0, 2, 1)).reshape(F, ksize * C).astype(mxu_dtype)
    w2m = jnp.transpose(params["w2"], (0, 2, 1)).reshape(F, ksize * F).astype(mxu_dtype)
    b2 = params["b2"].reshape(F, 1).astype(jnp.float32)
    s1v = s1.reshape(C, 1).astype(jnp.float32)
    o1v = o1.reshape(C, 1).astype(jnp.float32)

    # Zero-pad the length and split it into `stride` phases so that every conv
    # tap / maxpool window inside the kernel is a contiguous lane slice.
    Lp = L + 2 * pad
    Lq = -(-Lp // stride)                      # ceil(Lp / stride)
    Lp_pad = Lq * stride
    x_pad = jnp.pad(x_ncl.astype(jnp.float32),
                    ((0, 0), (0, 0), (pad, Lp_pad - L - pad)))
    # x_ph[n, r, c, m] = x_pad[n, c, stride*m + r]
    x_ph = jnp.transpose(x_pad.reshape(N, C, Lq, stride), (0, 3, 1, 2))

    # 1/0 mask of the real (un-padded) positions, in the same phase layout.
    pos = jnp.arange(Lp_pad)
    valid = (pos >= pad) & (pos < pad + L)
    mask = jnp.broadcast_to(
        jnp.transpose(valid.reshape(Lq, stride), (1, 0))[:, None, :],
        (stride, C, Lq)).astype(jnp.float32)

    # Samples per grid step (amortize the ~0.35us/step grid overhead).
    B = max(1, min(batch_block, N))
    while N % B != 0:
        B -= 1

    kernel = functools.partial(
        basic_block_kernel, stride=stride, ksize=ksize, pad=pad,
        in_ch=C, out_ch=F, l_out=L1, zero_pad=zero_pad,
        apply_bn1=(idx_block != 0), b_blk=B, mxu_dtype=mxu_dtype)

    out = pl.pallas_call(
        kernel,
        out_shape=jax.ShapeDtypeStruct((N, F, L1), jnp.float32),
        grid_spec=pltpu.PrefetchScalarGridSpec(
            num_scalar_prefetch=0,
            grid=(N // B,),
            in_specs=[
                pl.BlockSpec((B, stride, C, Lq), lambda n: (n, 0, 0, 0)),  # x phases
                pl.BlockSpec((stride, C, Lq), lambda n: (0, 0, 0)),        # valid mask
                pl.BlockSpec((F, ksize * C), lambda n: (0, 0)),            # W1 (im2col)
                pl.BlockSpec((F, 1), lambda n: (0, 0)),                    # folded bias1
                pl.BlockSpec((F, ksize * F), lambda n: (0, 0)),            # W2 (im2col)
                pl.BlockSpec((F, 1), lambda n: (0, 0)),                    # conv2 bias
                pl.BlockSpec((C, 1), lambda n: (0, 0)),                    # bn1 scale
                pl.BlockSpec((C, 1), lambda n: (0, 0)),                    # bn1 offset
            ],
            out_specs=pl.BlockSpec((B, F, L1), lambda n: (n, 0, 0)),
            scratch_shapes=[
                pltpu.VMEM((ksize * C, L1), mxu_dtype),       # conv1 im2col slab
                pltpu.VMEM((F, L1 + 2 * pad), mxu_dtype),     # padded conv1 activation
                pltpu.VMEM((ksize * F, L1), mxu_dtype),       # conv2 im2col slab
            ],
        ),
        compiler_params=pltpu.CompilerParams(
            # batch axis is embarrassingly parallel -> megacore sharding on v7x.
            dimension_semantics=("parallel",),
            # Raise the scoped-VMEM default (16 MiB on v5e) while staying well
            # inside v7x's 64 MiB physical budget.
            vmem_limit_bytes=32 * 1024 * 1024,
        ),
    )(x_ph, mask, w1m, bias1, w2m, b2, s1v, o1v)

    return out                                            # already NCL: (N, F, L1)


def reference_forward(x, params, *, stride, ksize, pad, idx_block, zero_pad):
    """Pure-JAX reference mirroring the PyTorch forward (eval mode)."""
    eps = 1e-5
    N, C, L = x.shape
    L1 = L // stride
    sc = x[:, :, :L1 * stride].reshape(N, C, L1, stride).max(axis=-1)
    if zero_pad:
        sc = jnp.concatenate([sc, jnp.zeros_like(sc)], axis=1)
    if idx_block != 0:
        xn = (x - params["m1"][None, :, None]) / jnp.sqrt(params["v1"][None, :, None] + eps)
        x = jax.nn.relu(xn * params["g1"][None, :, None] + params["beta1"][None, :, None])
    y = lax.conv_general_dilated(x, params["w1"], (stride,), [(pad, pad)],
                                 dimension_numbers=("NCH", "OIH", "NCH"),
                                 precision=lax.Precision.HIGHEST)
    y = y + params["b1"][None, :, None]
    yn = (y - params["m2"][None, :, None]) / jnp.sqrt(params["v2"][None, :, None] + eps)
    y = jax.nn.relu(yn * params["g2"][None, :, None] + params["beta2"][None, :, None])
    y = lax.conv_general_dilated(y, params["w2"], (1,), [(pad, pad)],
                                 dimension_numbers=("NCH", "OIH", "NCH"),
                                 precision=lax.Precision.HIGHEST)
    y = y + params["b2"][None, :, None]
    return y + sc


if __name__ == "__main__":
    # Small, shape-consistent configuration:
    #   in_planes=4, num_filters=8, stride=2, kernel_size_conv=15, padding=7
    #   idx_block=4, conv_increase_channels_at=4  -> flag_zero_pad=True, bn1 active
    N, C, L = 2, 4, 16
    F, K, STRIDE, PAD = 8, 15, 2, 7
    idx_block, conv_increase_channels_at = 4, 4
    zero_pad = (idx_block % conv_increase_channels_at == 0) and idx_block > 0

    key = jax.random.PRNGKey(0)
    ks = jax.random.split(key, 14)
    params = dict(
        w1=0.1 * jax.random.normal(ks[0], (F, C, K), jnp.float32),
        b1=0.1 * jax.random.normal(ks[1], (F,), jnp.float32),
        w2=0.1 * jax.random.normal(ks[2], (F, F, K), jnp.float32),
        b2=0.1 * jax.random.normal(ks[3], (F,), jnp.float32),
        g1=1.0 + 0.1 * jax.random.normal(ks[4], (C,), jnp.float32),
        beta1=0.1 * jax.random.normal(ks[5], (C,), jnp.float32),
        m1=0.1 * jax.random.normal(ks[6], (C,), jnp.float32),
        v1=0.5 + jnp.abs(jax.random.normal(ks[7], (C,), jnp.float32)) * 0.1,
        g2=1.0 + 0.1 * jax.random.normal(ks[8], (F,), jnp.float32),
        beta2=0.1 * jax.random.normal(ks[9], (F,), jnp.float32),
        m2=0.1 * jax.random.normal(ks[10], (F,), jnp.float32),
        v2=0.5 + jnp.abs(jax.random.normal(ks[11], (F,), jnp.float32)) * 0.1,
    )
    x = jax.random.normal(ks[12], (N, C, L), jnp.float32)

    ref = reference_forward(x, params, stride=STRIDE, ksize=K, pad=PAD,
                            idx_block=idx_block, zero_pad=zero_pad)

    # f32 MXU operands: tight check.
    out = basic_block_forward(x, params, stride=STRIDE, ksize=K, pad=PAD,
                              idx_block=idx_block, zero_pad=zero_pad,
                              mxu_dtype=jnp.float32)
    out = jax.block_until_ready(out)
    assert out.shape == ref.shape == (N, F, L // STRIDE), (out.shape, ref.shape)
    assert jnp.allclose(out, ref, atol=1e-3, rtol=1e-3), float(jnp.abs(out - ref).max())

    # bf16 MXU operands (recommended on v6e/v7x), f32 accumulation + f32 VPU math.
    out_bf16 = basic_block_forward(x, params, stride=STRIDE, ksize=K, pad=PAD,
                                   idx_block=idx_block, zero_pad=zero_pad,
                                   mxu_dtype=jnp.bfloat16)
    out_bf16 = jax.block_until_ready(out_bf16)
    assert jnp.allclose(out_bf16, ref, atol=2e-1, rtol=2e-1), \
        float(jnp.abs(out_bf16 - ref).max())

    print("KERNEL_OK")
</pallas_src>

<mosaic_0001>
module attributes {stable_mosaic.version = 11 : i64} {
  func.func @basic_block_kernel(%arg0: i32, %arg1: memref<2x2x4x15xf32, #tpu.memory_space<vmem>>, %arg2: memref<2x4x15xf32, #tpu.memory_space<vmem>>, %arg3: memref<8x60xf32, #tpu.memory_space<vmem>>, %arg4: memref<8x1xf32, #tpu.memory_space<vmem>>, %arg5: memref<8x120xf32, #tpu.memory_space<vmem>>, %arg6: memref<8x1xf32, #tpu.memory_space<vmem>>, %arg7: memref<4x1xf32, #tpu.memory_space<vmem>>, %arg8: memref<4x1xf32, #tpu.memory_space<vmem>>, %arg9: memref<2x8x8xf32, #tpu.memory_space<vmem>>, %arg10: memref<60x8xf32, #tpu.memory_space<vmem>>, %arg11: memref<8x22xf32, #tpu.memory_space<vmem>>, %arg12: memref<120x8xf32, #tpu.memory_space<vmem>>) attributes {dimension_semantics = [#tpu.dimension_semantics<parallel>], iteration_bounds = array<i64: 1>, scalar_prefetch = 0 : i64, scratch_operands = 3 : i64, tpu.core_type = #tpu.core_type<tc>, window_params = [{transform_indices = @transform_0, window_bounds = array<i64: 2, 2, 4, 15>}, {pipeline_mode = #tpu.pipeline_mode<synchronous>, transform_indices = @transform_1, window_bounds = array<i64: 2, 4, 15>}, {pipeline_mode = #tpu.pipeline_mode<synchronous>, transform_indices = @transform_2, window_bounds = array<i64: 8, 60>}, {pipeline_mode = #tpu.pipeline_mode<synchronous>, transform_indices = @transform_3, window_bounds = array<i64: 8, 1>}, {pipeline_mode = #tpu.pipeline_mode<synchronous>, transform_indices = @transform_4, window_bounds = array<i64: 8, 120>}, {pipeline_mode = #tpu.pipeline_mode<synchronous>, transform_indices = @transform_5, window_bounds = array<i64: 8, 1>}, {pipeline_mode = #tpu.pipeline_mode<synchronous>, transform_indices = @transform_6, window_bounds = array<i64: 4, 1>}, {pipeline_mode = #tpu.pipeline_mode<synchronous>, transform_indices = @transform_7, window_bounds = array<i64: 4, 1>}, {transform_indices = @transform_8, window_bounds = array<i64: 2, 8, 8>}]} {
    %cst = arith.constant 0.000000e+00 : f32
    %0 = vector.broadcast %cst : f32 to vector<8x7xf32>
    %c0 = arith.constant 0 : index
    %c0_0 = arith.constant 0 : index
    %1 = vector.load %arg11[%c0, %c0_0] : memref<8x22xf32, #tpu.memory_space<vmem>>, vector<8x7xf32>
    tpu.vector_store %arg11[%c0, %c0_0], %0 {strides = array<i32>} : memref<8x22xf32, #tpu.memory_space<vmem>>, vector<8x7xf32>,
    %cst_1 = arith.constant 0.000000e+00 : f32
    %2 = vector.broadcast %cst_1 : f32 to vector<8x7xf32>
    %c0_2 = arith.constant 0 : index
    %c15 = arith.constant 15 : index
    %3 = vector.load %arg11[%c0_2, %c15] : memref<8x22xf32, #tpu.memory_space<vmem>>, vector<8x7xf32>
    tpu.vector_store %arg11[%c0_2, %c15], %2 {strides = array<i32>} : memref<8x22xf32, #tpu.memory_space<vmem>>, vector<8x7xf32>,
    %c0_3 = arith.constant 0 : index
    %c0_4 = arith.constant 0 : index
    %c0_5 = arith.constant 0 : index
    %c0_6 = arith.constant 0 : index
    %4 = vector.load %arg1[%c0_3, %c0_4, %c0_5, %c0_6] : memref<2x2x4x15xf32, #tpu.memory_space<vmem>>, vector<1x2x4x15xf32>
    %5 = vector.shape_cast %4 : vector<1x2x4x15xf32> to vector<2x4x15xf32>
    %6 = vector.extract_strided_slice %5 {offsets = [1, 0, 3], sizes = [1, 4, 8], strides = [1, 1, 1]} : vector<2x4x15xf32> to vector<1x4x8xf32>
    %7 = vector.shape_cast %6 : vector<1x4x8xf32> to vector<4x8xf32>
    %8 = vector.extract_strided_slice %5 {offsets = [0, 0, 4], sizes = [1, 4, 8], strides = [1, 1, 1]} : vector<2x4x15xf32> to vector<1x4x8xf32>
    %9 = vector.shape_cast %8 : vector<1x4x8xf32> to vector<4x8xf32>
    %10 = arith.maximumf %7, %9 : vector<4x8xf32>
    %c0_7 = arith.constant 0 : index
    %c0_8 = arith.constant 0 : index
    %11 = vector.load %arg7[%c0_7, %c0_8] : memref<4x1xf32, #tpu.memory_space<vmem>>, vector<4x1xf32>
    %12 = vector.shape_cast %11 : vector<4x1xf32> to vector<1x4x1xf32>
    %13 = vector.broadcast %12 : vector<1x4x1xf32> to vector<2x4x15xf32>
    %14 = arith.mulf %5, %13 : vector<2x4x15xf32>
    %c0_9 = arith.constant 0 : index
    %c0_10 = arith.constant 0 : index
    %15 = vector.load %arg8[%c0_9, %c0_10] : memref<4x1xf32, #tpu.memory_space<vmem>>, vector<4x1xf32>
    %16 = vector.shape_cast %15 : vector<4x1xf32> to vector<1x4x1xf32>
    %17 = vector.broadcast %16 : vector<1x4x1xf32> to vector<2x4x15xf32>
    %18 = arith.addf %14, %17 : vector<2x4x15xf32>
    %cst_11 = arith.constant 0.000000e+00 : f32
    %19 = vector.broadcast %cst_11 : f32 to vector<2x4x15xf32>
    %20 = arith.maximumf %18, %19 : vector<2x4x15xf32>
    %c0_12 = arith.constant 0 : index
    %c0_13 = arith.constant 0 : index
    %c0_14 = arith.constant 0 : index
    %21 = vector.load %arg2[%c0_12, %c0_13, %c0_14] : memref<2x4x15xf32, #tpu.memory_space<vmem>>, vector<2x4x15xf32>
    %22 = arith.mulf %20, %21 : vector<2x4x15xf32>
    %23 = vector.extract_strided_slice %22 {offsets = [0, 0, 0], sizes = [1, 4, 8], strides = [1, 1, 1]} : vector<2x4x15xf32> to vector<1x4x8xf32>
    %24 = vector.shape_cast %23 : vector<1x4x8xf32> to vector<4x8xf32>
    %c0_15 = arith.constant 0 : index
    %c0_16 = arith.constant 0 : index
    %25 = vector.load %arg10[%c0_15, %c0_16] : memref<60x8xf32, #tpu.memory_space<vmem>>, vector<4x8xf32>
    tpu.vector_store %arg10[%c0_15, %c0_16], %24 {strides = array<i32>} : memref<60x8xf32, #tpu.memory_space<vmem>>, vector<4x8xf32>,
    %26 = vector.extract_strided_slice %22 {offsets = [1, 0, 0], sizes = [1, 4, 8], strides = [1, 1, 1]} : vector<2x4x15xf32> to vector<1x4x8xf32>
    %27 = vector.shape_cast %26 : vector<1x4x8xf32> to vector<4x8xf32>
    %c4 = arith.constant 4 : index
    %c0_17 = arith.constant 0 : index
    %28 = vector.load %arg10[%c4, %c0_17] : memref<60x8xf32, #tpu.memory_space<vmem>>, vector<4x8xf32>
    tpu.vector_store %arg10[%c4, %c0_17], %27 {strides = array<i32>} : memref<60x8xf32, #tpu.memory_space<vmem>>, vector<4x8xf32>,
    %29 = vector.extract_strided_slice %22 {offsets = [0, 0, 1], sizes = [1, 4, 8], strides = [1, 1, 1]} : vector<2x4x15xf32> to vector<1x4x8xf32>
    %30 = vector.shape_cast %29 : vector<1x4x8xf32> to vector<4x8xf32>
    %c8 = arith.constant 8 : index
    %c0_18 = arith.constant 0 : index
    %31 = vector.load %arg10[%c8, %c0_18] : memref<60x8xf32, #tpu.memory_space<vmem>>, vector<4x8xf32>
    tpu.vector_store %arg10[%c8, %c0_18], %30 {strides = array<i32>} : memref<60x8xf32, #tpu.memory_space<vmem>>, vector<4x8xf32>,
    %32 = vector.extract_strided_slice %22 {offsets = [1, 0, 1], sizes = [1, 4, 8], strides = [1, 1, 1]} : vector<2x4x15xf32> to vector<1x4x8xf32>
    %33 = vector.shape_cast %32 : vector<1x4x8xf32> to vector<4x8xf32>
    %c12 = arith.constant 12 : index
    %c0_19 = arith.constant 0 : index
    %34 = vector.load %arg10[%c12, %c0_19] : memref<60x8xf32, #tpu.memory_space<vmem>>, vector<4x8xf32>
    tpu.vector_store %arg10[%c12, %c0_19], %33 {strides = array<i32>} : memref<60x8xf32, #tpu.memory_space<vmem>>, vector<4x8xf32>,
    %35 = vector.extract_strided_slice %22 {offsets = [0, 0, 2], sizes = [1, 4, 8], strides = [1, 1, 1]} : vector<2x4x15xf32> to vector<1x4x8xf32>
    %36 = vector.shape_cast %35 : vector<1x4x8xf32> to vector<4x8xf32>
    %c16 = arith.constant 16 : index
    %c0_20 = arith.constant 0 : index
    %37 = vector.load %arg10[%c16, %c0_20] : memref<60x8xf32, #tpu.memory_space<vmem>>, vector<4x8xf32>
    tpu.vector_store %arg10[%c16, %c0_20], %36 {strides = array<i32>} : memref<60x8xf32, #tpu.memory_space<vmem>>, vector<4x8xf32>,
    %38 = vector.extract_strided_slice %22 {offsets = [1, 0, 2], sizes = [1, 4, 8], strides = [1, 1, 1]} : vector<2x4x15xf32> to vector<1x4x8xf32>
    %39 = vector.shape_cast %38 : vector<1x4x8xf32> to vector<4x8xf32>
    %c20 = arith.constant 20 : index
    %c0_21 = arith.constant 0 : index
    %40 = vector.load %arg10[%c20, %c0_21] : memref<60x8xf32, #tpu.memory_space<vmem>>, vector<4x8xf32>
    tpu.vector_store %arg10[%c20, %c0_21], %39 {strides = array<i32>} : memref<60x8xf32, #tpu.memory_space<vmem>>, vector<4x8xf32>,
    %41 = vector.extract_strided_slice %22 {offsets = [0, 0, 3], sizes = [1, 4, 8], strides = [1, 1, 1]} : vector<2x4x15xf32> to vector<1x4x8xf32>
    %42 = vector.shape_cast %41 : vector<1x4x8xf32> to vector<4x8xf32>
    %c24 = arith.constant 24 : index
    %c0_22 = arith.constant 0 : index
    %43 = vector.load %arg10[%c24, %c0_22] : memref<60x8xf32, #tpu.memory_space<vmem>>, vector<4x8xf32>
    tpu.vector_store %arg10[%c24, %c0_22], %42 {strides = array<i32>} : memref<60x8xf32, #tpu.memory_space<vmem>>, vector<4x8xf32>,
    %44 = vector.extract_strided_slice %22 {offsets = [1, 0, 3], sizes = [1, 4, 8], strides = [1, 1, 1]} : vector<2x4x15xf32> to vector<1x4x8xf32>
    %45 = vector.shape_cast %44 : vector<1x4x8xf32> to vector<4x8xf32>
    %c28 = arith.constant 28 : index
    %c0_23 = arith.constant 0 : index
    %46 = vector.load %arg10[%c28, %c0_23] : memref<60x8xf32, #tpu.memory_space<vmem>>, vector<4x8xf32>
    tpu.vector_store %arg10[%c28, %c0_23], %45 {strides = array<i32>} : memref<60x8xf32, #tpu.memory_space<vmem>>, vector<4x8xf32>,
    %47 = vector.extract_strided_slice %22 {offsets = [0, 0, 4], sizes = [1, 4, 8], strides = [1, 1, 1]} : vector<2x4x15xf32> to vector<1x4x8xf32>
    %48 = vector.shape_cast %47 : vector<1x4x8xf32> to vector<4x8xf32>
    %c32 = arith.constant 32 : index
    %c0_24 = arith.constant 0 : index
    %49 = vector.load %arg10[%c32, %c0_24] : memref<60x8xf32, #tpu.memory_space<vmem>>, vector<4x8xf32>
    tpu.vector_store %arg10[%c32, %c0_24], %48 {strides = array<i32>} : memref<60x8xf32, #tpu.memory_space<vmem>>, vector<4x8xf32>,
    %50 = vector.extract_strided_slice %22 {offsets = [1, 0, 4], sizes = [1, 4, 8], strides = [1, 1, 1]} : vector<2x4x15xf32> to vector<1x4x8xf32>
    %51 = vector.shape_cast %50 : vector<1x4x8xf32> to vector<4x8xf32>
    %c36 = arith.constant 36 : index
    %c0_25 = arith.constant 0 : index
    %52 = vector.load %arg10[%c36, %c0_25] : memref<60x8xf32, #tpu.memory_space<vmem>>, vector<4x8xf32>
    tpu.vector_store %arg10[%c36, %c0_25], %51 {strides = array<i32>} : memref<60x8xf32, #tpu.memory_space<vmem>>, vector<4x8xf32>,
    %53 = vector.extract_strided_slice %22 {offsets = [0, 0, 5], sizes = [1, 4, 8], strides = [1, 1, 1]} : vector<2x4x15xf32> to vector<1x4x8xf32>
    %54 = vector.shape_cast %53 : vector<1x4x8xf32> to vector<4x8xf32>
    %c40 = arith.constant 40 : index
    %c0_26 = arith.constant 0 : index
    %55 = vector.load %arg10[%c40, %c0_26] : memref<60x8xf32, #tpu.memory_space<vmem>>, vector<4x8xf32>
    tpu.vector_store %arg10[%c40, %c0_26], %54 {strides = array<i32>} : memref<60x8xf32, #tpu.memory_space<vmem>>, vector<4x8xf32>,
    %56 = vector.extract_strided_slice %22 {offsets = [1, 0, 5], sizes = [1, 4, 8], strides = [1, 1, 1]} : vector<2x4x15xf32> to vector<1x4x8xf32>
    %57 = vector.shape_cast %56 : vector<1x4x8xf32> to vector<4x8xf32>
    %c44 = arith.constant 44 : index
    %c0_27 = arith.constant 0 : index
    %58 = vector.load %arg10[%c44, %c0_27] : memref<60x8xf32, #tpu.memory_space<vmem>>, vector<4x8xf32>
    tpu.vector_store %arg10[%c44, %c0_27], %57 {strides = array<i32>} : memref<60x8xf32, #tpu.memory_space<vmem>>, vector<4x8xf32>,
    %59 = vector.extract_strided_slice %22 {offsets = [0, 0, 6], sizes = [1, 4, 8], strides = [1, 1, 1]} : vector<2x4x15xf32> to vector<1x4x8xf32>
    %60 = vector.shape_cast %59 : vector<1x4x8xf32> to vector<4x8xf32>
    %c48 = arith.constant 48 : index
    %c0_28 = arith.constant 0 : index
    %61 = vector.load %arg10[%c48, %c0_28] : memref<60x8xf32, #tpu.memory_space<vmem>>, vector<4x8xf32>
    tpu.vector_store %arg10[%c48, %c0_28], %60 {strides = array<i32>} : memref<60x8xf32, #tpu.memory_space<vmem>>, vector<4x8xf32>,
    %62 = vector.extract_strided_slice %22 {offsets = [1, 0, 6], sizes = [1, 4, 8], strides = [1, 1, 1]} : vector<2x4x15xf32> to vector<1x4x8xf32>
    %63 = vector.shape_cast %62 : vector<1x4x8xf32> to vector<4x8xf32>
    %c52 = arith.constant 52 : index
    %c0_29 = arith.constant 0 : index
    %64 = vector.load %arg10[%c52, %c0_29] : memref<60x8xf32, #tpu.memory_space<vmem>>, vector<4x8xf32>
    tpu.vector_store %arg10[%c52, %c0_29], %63 {strides = array<i32>} : memref<60x8xf32, #tpu.memory_space<vmem>>, vector<4x8xf32>,
    %65 = vector.extract_strided_slice %22 {offsets = [0, 0, 7], sizes = [1, 4, 8], strides = [1, 1, 1]} : vector<2x4x15xf32> to vector<1x4x8xf32>
    %66 = vector.shape_cast %65 : vector<1x4x8xf32> to vector<4x8xf32>
    %c56 = arith.constant 56 : index
    %c0_30 = arith.constant 0 : index
    %67 = vector.load %arg10[%c56, %c0_30] : memref<60x8xf32, #tpu.memory_space<vmem>>, vector<4x8xf32>
    tpu.vector_store %arg10[%c56, %c0_30], %66 {strides = array<i32>} : memref<60x8xf32, #tpu.memory_space<vmem>>, vector<4x8xf32>,
    %c0_31 = arith.constant 0 : index
    %c0_32 = arith.constant 0 : index
    %68 = vector.load %arg3[%c0_31, %c0_32] : memref<8x60xf32, #tpu.memory_space<vmem>>, vector<8x60xf32>
    %c0_33 = arith.constant 0 : index
    %c0_34 = arith.constant 0 : index
    %69 = vector.load %arg10[%c0_33, %c0_34] : memref<60x8xf32, #tpu.memory_space<vmem>>, vector<60x8xf32>
    %cst_35 = arith.constant dense<0.000000e+00> : vector<8x8xf32>
    %70 = tpu.matmul %68, %69, %cst_35 {dimension_numbers = #tpu.dot_dimension_numbers<[1], [0], [0], [1], [0, 0, 1, 1], [], []>} : vector<8x60xf32>, vector<60x8xf32>, vector<8x8xf32> -> vector<8x8xf32>
    %c0_36 = arith.constant 0 : index
    %c0_37 = arith.constant 0 : index
    %71 = vector.load %arg4[%c0_36, %c0_37] : memref<8x1xf32, #tpu.memory_space<vmem>>, vector<8x1xf32>
    %72 = vector.broadcast %71 : vector<8x1xf32> to vector<8x8xf32>
    %73 = arith.addf %70, %72 : vector<8x8xf32>
    %cst_38 = arith.constant 0.000000e+00 : f32
    %74 = vector.broadcast %cst_38 : f32 to vector<8x8xf32>
    %75 = arith.maximumf %73, %74 : vector<8x8xf32>
    %c0_39 = arith.constant 0 : index
    %c7 = arith.constant 7 : index
    %76 = vector.load %arg11[%c0_39, %c7] : memref<8x22xf32, #tpu.memory_space<vmem>>, vector<8x8xf32>
    tpu.vector_store %arg11[%c0_39, %c7], %75 {strides = array<i32>} : memref<8x22xf32, #tpu.memory_space<vmem>>, vector<8x8xf32>,
    %c0_40 = arith.constant 0 : index
    %c0_41 = arith.constant 0 : index
    %77 = vector.load %arg11[%c0_40, %c0_41] : memref<8x22xf32, #tpu.memory_space<vmem>>, vector<8x8xf32>
    %c0_42 = arith.constant 0 : index
    %c0_43 = arith.constant 0 : index
    %78 = vector.load %arg12[%c0_42, %c0_43] : memref<120x8xf32, #tpu.memory_space<vmem>>, vector<8x8xf32>
    tpu.vector_store %arg12[%c0_42, %c0_43], %77 {strides = array<i32>} : memref<120x8xf32, #tpu.memory_space<vmem>>, vector<8x8xf32>,
    %c0_44 = arith.constant 0 : index
    %c1 = arith.constant 1 : index
    %79 = vector.load %arg11[%c0_44, %c1] : memref<8x22xf32, #tpu.memory_space<vmem>>, vector<8x8xf32>
    %c8_45 = arith.constant 8 : index
    %c0_46 = arith.constant 0 : index
    %80 = vector.load %arg12[%c8_45, %c0_46] : memref<120x8xf32, #tpu.memory_space<vmem>>, vector<8x8xf32>
    tpu.vector_store %arg12[%c8_45, %c0_46], %79 {strides = array<i32>} : memref<120x8xf32, #tpu.memory_space<vmem>>, vector<8x8xf32>,
    %c0_47 = arith.constant 0 : index
    %c2 = arith.constant 2 : index
    %81 = vector.load %arg11[%c0_47, %c2] : memref<8x22xf32, #tpu.memory_space<vmem>>, vector<8x8xf32>
    %c16_48 = arith.constant 16 : index
    %c0_49 = arith.constant 0 : index
    %82 = vector.load %arg12[%c16_48, %c0_49] : memref<120x8xf32, #tpu.memory_space<vmem>>, vector<8x8xf32>
    tpu.vector_store %arg12[%c16_48, %c0_49], %81 {strides = array<i32>} : memref<120x8xf32, #tpu.memory_space<vmem>>, vector<8x8xf32>,
    %c0_50 = arith.constant 0 : index
    %c3 = arith.constant 3 : index
    %83 = vector.load %arg11[%c0_50, %c3] : memref<8x22xf32, #tpu.memory_space<vmem>>, vector<8x8xf32>
    %c24_51 = arith.constant 24 : index
    %c0_52 = arith.constant 0 : index
    %84 = vector.load %arg12[%c24_51, %c0_52] : memref<120x8xf32, #tpu.memory_space<vmem>>, vector<8x8xf32>
    tpu.vector_store %arg12[%c24_51, %c0_52], %83 {strides = array<i32>} : memref<120x8xf32, #tpu.memory_space<vmem>>, vector<8x8xf32>,
    %c0_53 = arith.constant 0 : index
    %c4_54 = arith.constant 4 : index
    %85 = vector.load %arg11[%c0_53, %c4_54] : memref<8x22xf32, #tpu.memory_space<vmem>>, vector<8x8xf32>
    %c32_55 = arith.constant 32 : index
    %c0_56 = arith.constant 0 : index
    %86 = vector.load %arg12[%c32_55, %c0_56] : memref<120x8xf32, #tpu.memory_space<vmem>>, vector<8x8xf32>
    tpu.vector_store %arg12[%c32_55, %c0_56], %85 {strides = array<i32>} : memref<120x8xf32, #tpu.memory_space<vmem>>, vector<8x8xf32>,
    %c0_57 = arith.constant 0 : index
    %c5 = arith.constant 5 : index
    %87 = vector.load %arg11[%c0_57, %c5] : memref<8x22xf32, #tpu.memory_space<vmem>>, vector<8x8xf32>
    %c40_58 = arith.constant 40 : index
    %c0_59 = arith.constant 0 : index
    %88 = vector.load %arg12[%c40_58, %c0_59] : memref<120x8xf32, #tpu.memory_space<vmem>>, vector<8x8xf32>
    tpu.vector_store %arg12[%c40_58, %c0_59], %87 {strides = array<i32>} : memref<120x8xf32, #tpu.memory_space<vmem>>, vector<8x8xf32>,
    %c0_60 = arith.constant 0 : index
    %c6 = arith.constant 6 : index
    %89 = vector.load %arg11[%c0_60, %c6] : memref<8x22xf32, #tpu.memory_space<vmem>>, vector<8x8xf32>
    %c48_61 = arith.constant 48 : index
    %c0_62 = arith.constant 0 : index
    %90 = vector.load %arg12[%c48_61, %c0_62] : memref<120x8xf32, #tpu.memory_space<vmem>>, vector<8x8xf32>
    tpu.vector_store %arg12[%c48_61, %c0_62], %89 {strides = array<i32>} : memref<120x8xf32, #tpu.memory_space<vmem>>, vector<8x8xf32>,
    %c0_63 = arith.constant 0 : index
    %c7_64 = arith.constant 7 : index
    %91 = vector.load %arg11[%c0_63, %c7_64] : memref<8x22xf32, #tpu.memory_space<vmem>>, vector<8x8xf32>
    %c56_65 = arith.constant 56 : index
    %c0_66 = arith.constant 0 : index
    %92 = vector.load %arg12[%c56_65, %c0_66] : memref<120x8xf32, #tpu.memory_space<vmem>>, vector<8x8xf32>
    tpu.vector_store %arg12[%c56_65, %c0_66], %91 {strides = array<i32>} : memref<120x8xf32, #tpu.memory_space<vmem>>, vector<8x8xf32>,
    %c0_67 = arith.constant 0 : index
    %c8_68 = arith.constant 8 : index
    %93 = vector.load %arg11[%c0_67, %c8_68] : memref<8x22xf32, #tpu.memory_space<vmem>>, vector<8x8xf32>
    %c64 = arith.constant 64 : index
    %c0_69 = arith.constant 0 : index
    %94 = vector.load %arg12[%c64, %c0_69] : memref<120x8xf32, #tpu.memory_space<vmem>>, vector<8x8xf32>
    tpu.vector_store %arg12[%c64, %c0_69], %93 {strides = array<i32>} : memref<120x8xf32, #tpu.memory_space<vmem>>, vector<8x8xf32>,
    %c0_70 = arith.constant 0 : index
    %c9 = arith.constant 9 : index
    %95 = vector.load %arg11[%c0_70, %c9] : memref<8x22xf32, #tpu.memory_space<vmem>>, vector<8x8xf32>
    %c72 = arith.constant 72 : index
    %c0_71 = arith.constant 0 : index
    %96 = vector.load %arg12[%c72, %c0_71] : memref<120x8xf32, #tpu.memory_space<vmem>>, vector<8x8xf32>
    tpu.vector_store %arg12[%c72, %c0_71], %95 {strides = array<i32>} : memref<120x8xf32, #tpu.memory_space<vmem>>, vector<8x8xf32>,
    %c0_72 = arith.constant 0 : index
    %c10 = arith.constant 10 : index
    %97 = vector.load %arg11[%c0_72, %c10] : memref<8x22xf32, #tpu.memory_space<vmem>>, vector<8x8xf32>
    %c80 = arith.constant 80 : index
    %c0_73 = arith.constant 0 : index
    %98 = vector.load %arg12[%c80, %c0_73] : memref<120x8xf32, #tpu.memory_space<vmem>>, vector<8x8xf32>
    tpu.vector_store %arg12[%c80, %c0_73], %97 {strides = array<i32>} : memref<120x8xf32, #tpu.memory_space<vmem>>, vector<8x8xf32>,
    %c0_74 = arith.constant 0 : index
    %c11 = arith.constant 11 : index
    %99 = vector.load %arg11[%c0_74, %c11] : memref<8x22xf32, #tpu.memory_space<vmem>>, vector<8x8xf32>
    %c88 = arith.constant 88 : index
    %c0_75 = arith.constant 0 : index
    %100 = vector.load %arg12[%c88, %c0_75] : memref<120x8xf32, #tpu.memory_space<vmem>>, vector<8x8xf32>
    tpu.vector_store %arg12[%c88, %c0_75], %99 {strides = array<i32>} : memref<120x8xf32, #tpu.memory_space<vmem>>, vector<8x8xf32>,
    %c0_76 = arith.constant 0 : index
    %c12_77 = arith.constant 12 : index
    %101 = vector.load %arg11[%c0_76, %c12_77] : memref<8x22xf32, #tpu.memory_space<vmem>>, vector<8x8xf32>
    %c96 = arith.constant 96 : index
    %c0_78 = arith.constant 0 : index
    %102 = vector.load %arg12[%c96, %c0_78] : memref<120x8xf32, #tpu.memory_space<vmem>>, vector<8x8xf32>
    tpu.vector_store %arg12[%c96, %c0_78], %101 {strides = array<i32>} : memref<120x8xf32, #tpu.memory_space<vmem>>, vector<8x8xf32>,
    %c0_79 = arith.constant 0 : index
    %c13 = arith.constant 13 : index
    %103 = vector.load %arg11[%c0_79, %c13] : memref<8x22xf32, #tpu.memory_space<vmem>>, vector<8x8xf32>
    %c104 = arith.constant 104 : index
    %c0_80 = arith.constant 0 : index
    %104 = vector.load %arg12[%c104, %c0_80] : memref<120x8xf32, #tpu.memory_space<vmem>>, vector<8x8xf32>
    tpu.vector_store %arg12[%c104, %c0_80], %103 {strides = array<i32>} : memref<120x8xf32, #tpu.memory_space<vmem>>, vector<8x8xf32>,
    %c0_81 = arith.constant 0 : index
    %c14 = arith.constant 14 : index
    %105 = vector.load %arg11[%c0_81, %c14] : memref<8x22xf32, #tpu.memory_space<vmem>>, vector<8x8xf32>
    %c112 = arith.constant 112 : index
    %c0_82 = arith.constant 0 : index
    %106 = vector.load %arg12[%c112, %c0_82] : memref<120x8xf32, #tpu.memory_space<vmem>>, vector<8x8xf32>
    tpu.vector_store %arg12[%c112, %c0_82], %105 {strides = array<i32>} : memref<120x8xf32, #tpu.memory_space<vmem>>, vector<8x8xf32>,
    %c0_83 = arith.constant 0 : index
    %c0_84 = arith.constant 0 : index
    %107 = vector.load %arg5[%c0_83, %c0_84] : memref<8x120xf32, #tpu.memory_space<vmem>>, vector<8x120xf32>
    %c0_85 = arith.constant 0 : index
    %c0_86 = arith.constant 0 : index
    %108 = vector.load %arg12[%c0_85, %c0_86] : memref<120x8xf32, #tpu.memory_space<vmem>>, vector<120x8xf32>
    %cst_87 = arith.constant dense<0.000000e+00> : vector<8x8xf32>
    %109 = tpu.matmul %107, %108, %cst_87 {dimension_numbers = #tpu.dot_dimension_numbers<[1], [0], [0], [1], [0, 0, 1, 1], [], []>} : vector<8x120xf32>, vector<120x8xf32>, vector<8x8xf32> -> vector<8x8xf32>
    %c0_88 = arith.constant 0 : index
    %c0_89 = arith.constant 0 : index
    %110 = vector.load %arg6[%c0_88, %c0_89] : memref<8x1xf32, #tpu.memory_space<vmem>>, vector<8x1xf32>
    %111 = vector.broadcast %110 : vector<8x1xf32> to vector<8x8xf32>
    %112 = arith.addf %109, %111 : vector<8x8xf32>
    %113 = vector.extract_strided_slice %112 {offsets = [0, 0], sizes = [4, 8], strides = [1, 1]} : vector<8x8xf32> to vector<4x8xf32>
    %114 = arith.addf %113, %10 : vector<4x8xf32>
    %c0_90 = arith.constant 0 : index
    %c0_91 = arith.constant 0 : index
    %c0_92 = arith.constant 0 : index
    %115 = vector.load %arg9[%c0_90, %c0_91, %c0_92] : memref<2x8x8xf32, #tpu.memory_space<vmem>>, vector<1x4x8xf32>
    %116 = vector.shape_cast %115 : vector<1x4x8xf32> to vector<4x8xf32>
    %117 = vector.shape_cast %114 : vector<4x8xf32> to vector<1x4x8xf32>
    tpu.vector_store %arg9[%c0_90, %c0_91, %c0_92], %117 {strides = array<i32>} : memref<2x8x8xf32, #tpu.memory_space<vmem>>, vector<1x4x8xf32>,
    %118 = vector.extract_strided_slice %112 {offsets = [4, 0], sizes = [4, 8], strides = [1, 1]} : vector<8x8xf32> to vector<4x8xf32>
    %c0_93 = arith.constant 0 : index
    %c4_94 = arith.constant 4 : index
    %c0_95 = arith.constant 0 : index
    %119 = vector.load %arg9[%c0_93, %c4_94, %c0_95] : memref<2x8x8xf32, #tpu.memory_space<vmem>>, vector<1x4x8xf32>
    %120 = vector.shape_cast %119 : vector<1x4x8xf32> to vector<4x8xf32>
    %121 = vector.shape_cast %118 : vector<4x8xf32> to vector<1x4x8xf32>
    tpu.vector_store %arg9[%c0_93, %c4_94, %c0_95], %121 {strides = array<i32>} : memref<2x8x8xf32, #tpu.memory_space<vmem>>, vector<1x4x8xf32>,
    %c1_96 = arith.constant 1 : index
    %c0_97 = arith.constant 0 : index
    %c0_98 = arith.constant 0 : index
    %c0_99 = arith.constant 0 : index
    %122 = vector.load %arg1[%c1_96, %c0_97, %c0_98, %c0_99] : memref<2x2x4x15xf32, #tpu.memory_space<vmem>>, vector<1x2x4x15xf32>
    %123 = vector.shape_cast %122 : vector<1x2x4x15xf32> to vector<2x4x15xf32>
    %124 = vector.extract_strided_slice %123 {offsets = [1, 0, 3], sizes = [1, 4, 8], strides = [1, 1, 1]} : vector<2x4x15xf32> to vector<1x4x8xf32>
    %125 = vector.shape_cast %124 : vector<1x4x8xf32> to vector<4x8xf32>
    %126 = vector.extract_strided_slice %123 {offsets = [0, 0, 4], sizes = [1, 4, 8], strides = [1, 1, 1]} : vector<2x4x15xf32> to vector<1x4x8xf32>
    %127 = vector.shape_cast %126 : vector<1x4x8xf32> to vector<4x8xf32>
    %128 = arith.maximumf %125, %127 : vector<4x8xf32>
    %c0_100 = arith.constant 0 : index
    %c0_101 = arith.constant 0 : index
    %129 = vector.load %arg7[%c0_100, %c0_101] : memref<4x1xf32, #tpu.memory_space<vmem>>, vector<4x1xf32>
    %130 = vector.shape_cast %129 : vector<4x1xf32> to vector<1x4x1xf32>
    %131 = vector.broadcast %130 : vector<1x4x1xf32> to vector<2x4x15xf32>
    %132 = arith.mulf %123, %131 : vector<2x4x15xf32>
    %c0_102 = arith.constant 0 : index
    %c0_103 = arith.constant 0 : index
    %133 = vector.load %arg8[%c0_102, %c0_103] : memref<4x1xf32, #tpu.memory_space<vmem>>, vector<4x1xf32>
    %134 = vector.shape_cast %133 : vector<4x1xf32> to vector<1x4x1xf32>
    %135 = vector.broadcast %134 : vector<1x4x1xf32> to vector<2x4x15xf32>
    %136 = arith.addf %132, %135 : vector<2x4x15xf32>
    %cst_104 = arith.constant 0.000000e+00 : f32
    %137 = vector.broadcast %cst_104 : f32 to vector<2x4x15xf32>
    %138 = arith.maximumf %136, %137 : vector<2x4x15xf32>
    %c0_105 = arith.constant 0 : index
    %c0_106 = arith.constant 0 : index
    %c0_107 = arith.constant 0 : index
    %139 = vector.load %arg2[%c0_105, %c0_106, %c0_107] : memref<2x4x15xf32, #tpu.memory_space<vmem>>, vector<2x4x15xf32>
    %140 = arith.mulf %138, %139 : vector<2x4x15xf32>
    %141 = vector.extract_strided_slice %140 {offsets = [0, 0, 0], sizes = [1, 4, 8], strides = [1, 1, 1]} : vector<2x4x15xf32> to vector<1x4x8xf32>
    %142 = vector.shape_cast %141 : vector<1x4x8xf32> to vector<4x8xf32>
    %c0_108 = arith.constant 0 : index
    %c0_109 = arith.constant 0 : index
    %143 = vector.load %arg10[%c0_108, %c0_109] : memref<60x8xf32, #tpu.memory_space<vmem>>, vector<4x8xf32>
    tpu.vector_store %arg10[%c0_108, %c0_109], %142 {strides = array<i32>} : memref<60x8xf32, #tpu.memory_space<vmem>>, vector<4x8xf32>,
    %144 = vector.extract_strided_slice %140 {offsets = [1, 0, 0], sizes = [1, 4, 8], strides = [1, 1, 1]} : vector<2x4x15xf32> to vector<1x4x8xf32>
    %145 = vector.shape_cast %144 : vector<1x4x8xf32> to vector<4x8xf32>
    %c4_110 = arith.constant 4 : index
    %c0_111 = arith.constant 0 : index
    %146 = vector.load %arg10[%c4_110, %c0_111] : memref<60x8xf32, #tpu.memory_space<vmem>>, vector<4x8xf32>
    tpu.vector_store %arg10[%c4_110, %c0_111], %145 {strides = array<i32>} : memref<60x8xf32, #tpu.memory_space<vmem>>, vector<4x8xf32>,
    %147 = vector.extract_strided_slice %140 {offsets = [0, 0, 1], sizes = [1, 4, 8], strides = [1, 1, 1]} : vector<2x4x15xf32> to vector<1x4x8xf32>
    %148 = vector.shape_cast %147 : vector<1x4x8xf32> to vector<4x8xf32>
    %c8_112 = arith.constant 8 : index
    %c0_113 = arith.constant 0 : index
    %149 = vector.load %arg10[%c8_112, %c0_113] : memref<60x8xf32, #tpu.memory_space<vmem>>, vector<4x8xf32>
    tpu.vector_store %arg10[%c8_112, %c0_113], %148 {strides = array<i32>} : memref<60x8xf32, #tpu.memory_space<vmem>>, vector<4x8xf32>,
    %150 = vector.extract_strided_slice %140 {offsets = [1, 0, 1], sizes = [1, 4, 8], strides = [1, 1, 1]} : vector<2x4x15xf32> to vector<1x4x8xf32>
    %151 = vector.shape_cast %150 : vector<1x4x8xf32> to vector<4x8xf32>
    %c12_114 = arith.constant 12 : index
    %c0_115 = arith.constant 0 : index
    %152 = vector.load %arg10[%c12_114, %c0_115] : memref<60x8xf32, #tpu.memory_space<vmem>>, vector<4x8xf32>
    tpu.vector_store %arg10[%c12_114, %c0_115], %151 {strides = array<i32>} : memref<60x8xf32, #tpu.memory_space<vmem>>, vector<4x8xf32>,
    %153 = vector.extract_strided_slice %140 {offsets = [0, 0, 2], sizes = [1, 4, 8], strides = [1, 1, 1]} : vector<2x4x15xf32> to vector<1x4x8xf32>
    %154 = vector.shape_cast %153 : vector<1x4x8xf32> to vector<4x8xf32>
    %c16_116 = arith.constant 16 : index
    %c0_117 = arith.constant 0 : index
    %155 = vector.load %arg10[%c16_116, %c0_117] : memref<60x8xf32, #tpu.memory_space<vmem>>, vector<4x8xf32>
    tpu.vector_store %arg10[%c16_116, %c0_117], %154 {strides = array<i32>} : memref<60x8xf32, #tpu.memory_space<vmem>>, vector<4x8xf32>,
    %156 = vector.extract_strided_slice %140 {offsets = [1, 0, 2], sizes = [1, 4, 8], strides = [1, 1, 1]} : vector<2x4x15xf32> to vector<1x4x8xf32>
    %157 = vector.shape_cast %156 : vector<1x4x8xf32> to vector<4x8xf32>
    %c20_118 = arith.constant 20 : index
    %c0_119 = arith.constant 0 : index
    %158 = vector.load %arg10[%c20_118, %c0_119] : memref<60x8xf32, #tpu.memory_space<vmem>>, vector<4x8xf32>
    tpu.vector_store %arg10[%c20_118, %c0_119], %157 {strides = array<i32>} : memref<60x8xf32, #tpu.memory_space<vmem>>, vector<4x8xf32>,
    %159 = vector.extract_strided_slice %140 {offsets = [0, 0, 3], sizes = [1, 4, 8], strides = [1, 1, 1]} : vector<2x4x15xf32> to vector<1x4x8xf32>
    %160 = vector.shape_cast %159 : vector<1x4x8xf32> to vector<4x8xf32>
    %c24_120 = arith.constant 24 : index
    %c0_121 = arith.constant 0 : index
    %161 = vector.load %arg10[%c24_120, %c0_121] : memref<60x8xf32, #tpu.memory_space<vmem>>, vector<4x8xf32>
    tpu.vector_store %arg10[%c24_120, %c0_121], %160 {strides = array<i32>} : memref<60x8xf32, #tpu.memory_space<vmem>>, vector<4x8xf32>,
    %162 = vector.extract_strided_slice %140 {offsets = [1, 0, 3], sizes = [1, 4, 8], strides = [1, 1, 1]} : vector<2x4x15xf32> to vector<1x4x8xf32>
    %163 = vector.shape_cast %162 : vector<1x4x8xf32> to vector<4x8xf32>
    %c28_122 = arith.constant 28 : index
    %c0_123 = arith.constant 0 : index
    %164 = vector.load %arg10[%c28_122, %c0_123] : memref<60x8xf32, #tpu.memory_space<vmem>>, vector<4x8xf32>
    tpu.vector_store %arg10[%c28_122, %c0_123], %163 {strides = array<i32>} : memref<60x8xf32, #tpu.memory_space<vmem>>, vector<4x8xf32>,
    %165 = vector.extract_strided_slice %140 {offsets = [0, 0, 4], sizes = [1, 4, 8], strides = [1, 1, 1]} : vector<2x4x15xf32> to vector<1x4x8xf32>
    %166 = vector.shape_cast %165 : vector<1x4x8xf32> to vector<4x8xf32>
    %c32_124 = arith.constant 32 : index
    %c0_125 = arith.constant 0 : index
    %167 = vector.load %arg10[%c32_124, %c0_125] : memref<60x8xf32, #tpu.memory_space<vmem>>, vector<4x8xf32>
    tpu.vector_store %arg10[%c32_124, %c0_125], %166 {strides = array<i32>} : memref<60x8xf32, #tpu.memory_space<vmem>>, vector<4x8xf32>,
    %168 = vector.extract_strided_slice %140 {offsets = [1, 0, 4], sizes = [1, 4, 8], strides = [1, 1, 1]} : vector<2x4x15xf32> to vector<1x4x8xf32>
    %169 = vector.shape_cast %168 : vector<1x4x8xf32> to vector<4x8xf32>
    %c36_126 = arith.constant 36 : index
    %c0_127 = arith.constant 0 : index
    %170 = vector.load %arg10[%c36_126, %c0_127] : memref<60x8xf32, #tpu.memory_space<vmem>>, vector<4x8xf32>
    tpu.vector_store %arg10[%c36_126, %c0_127], %169 {strides = array<i32>} : memref<60x8xf32, #tpu.memory_space<vmem>>, vector<4x8xf32>,
    %171 = vector.extract_strided_slice %140 {offsets = [0, 0, 5], sizes = [1, 4, 8], strides = [1, 1, 1]} : vector<2x4x15xf32> to vector<1x4x8xf32>
    %172 = vector.shape_cast %171 : vector<1x4x8xf32> to vector<4x8xf32>
    %c40_128 = arith.constant 40 : index
    %c0_129 = arith.constant 0 : index
    %173 = vector.load %arg10[%c40_128, %c0_129] : memref<60x8xf32, #tpu.memory_space<vmem>>, vector<4x8xf32>
    tpu.vector_store %arg10[%c40_128, %c0_129], %172 {strides = array<i32>} : memref<60x8xf32, #tpu.memory_space<vmem>>, vector<4x8xf32>,
    %174 = vector.extract_strided_slice %140 {offsets = [1, 0, 5], sizes = [1, 4, 8], strides = [1, 1, 1]} : vector<2x4x15xf32> to vector<1x4x8xf32>
    %175 = vector.shape_cast %174 : vector<1x4x8xf32> to vector<4x8xf32>
    %c44_130 = arith.constant 44 : index
    %c0_131 = arith.constant 0 : index
    %176 = vector.load %arg10[%c44_130, %c0_131] : memref<60x8xf32, #tpu.memory_space<vmem>>, vector<4x8xf32>
    tpu.vector_store %arg10[%c44_130, %c0_131], %175 {strides = array<i32>} : memref<60x8xf32, #tpu.memory_space<vmem>>, vector<4x8xf32>,
    %177 = vector.extract_strided_slice %140 {offsets = [0, 0, 6], sizes = [1, 4, 8], strides = [1, 1, 1]} : vector<2x4x15xf32> to vector<1x4x8xf32>
    %178 = vector.shape_cast %177 : vector<1x4x8xf32> to vector<4x8xf32>
    %c48_132 = arith.constant 48 : index
    %c0_133 = arith.constant 0 : index
    %179 = vector.load %arg10[%c48_132, %c0_133] : memref<60x8xf32, #tpu.memory_space<vmem>>, vector<4x8xf32>
    tpu.vector_store %arg10[%c48_132, %c0_133], %178 {strides = array<i32>} : memref<60x8xf32, #tpu.memory_space<vmem>>, vector<4x8xf32>,
    %180 = vector.extract_strided_slice %140 {offsets = [1, 0, 6], sizes = [1, 4, 8], strides = [1, 1, 1]} : vector<2x4x15xf32> to vector<1x4x8xf32>
    %181 = vector.shape_cast %180 : vector<1x4x8xf32> to vector<4x8xf32>
    %c52_134 = arith.constant 52 : index
    %c0_135 = arith.constant 0 : index
    %182 = vector.load %arg10[%c52_134, %c0_135] : memref<60x8xf32, #tpu.memory_space<vmem>>, vector<4x8xf32>
    tpu.vector_store %arg10[%c52_134, %c0_135], %181 {strides = array<i32>} : memref<60x8xf32, #tpu.memory_space<vmem>>, vector<4x8xf32>,
    %183 = vector.extract_strided_slice %140 {offsets = [0, 0, 7], sizes = [1, 4, 8], strides = [1, 1, 1]} : vector<2x4x15xf32> to vector<1x4x8xf32>
    %184 = vector.shape_cast %183 : vector<1x4x8xf32> to vector<4x8xf32>
    %c56_136 = arith.constant 56 : index
    %c0_137 = arith.constant 0 : index
    %185 = vector.load %arg10[%c56_136, %c0_137] : memref<60x8xf32, #tpu.memory_space<vmem>>, vector<4x8xf32>
    tpu.vector_store %arg10[%c56_136, %c0_137], %184 {strides = array<i32>} : memref<60x8xf32, #tpu.memory_space<vmem>>, vector<4x8xf32>,
    %c0_138 = arith.constant 0 : index
    %c0_139 = arith.constant 0 : index
    %186 = vector.load %arg3[%c0_138, %c0_139] : memref<8x60xf32, #tpu.memory_space<vmem>>, vector<8x60xf32>
    %c0_140 = arith.constant 0 : index
    %c0_141 = arith.constant 0 : index
    %187 = vector.load %arg10[%c0_140, %c0_141] : memref<60x8xf32, #tpu.memory_space<vmem>>, vector<60x8xf32>
    %cst_142 = arith.constant dense<0.000000e+00> : vector<8x8xf32>
    %188 = tpu.matmul %186, %187, %cst_142 {dimension_numbers = #tpu.dot_dimension_numbers<[1], [0], [0], [1], [0, 0, 1, 1], [], []>} : vector<8x60xf32>, vector<60x8xf32>, vector<8x8xf32> -> vector<8x8xf32>
    %c0_143 = arith.constant 0 : index
    %c0_144 = arith.constant 0 : index
    %189 = vector.load %arg4[%c0_143, %c0_144] : memref<8x1xf32, #tpu.memory_space<vmem>>, vector<8x1xf32>
    %190 = vector.broadcast %189 : vector<8x1xf32> to vector<8x8xf32>
    %191 = arith.addf %188, %190 : vector<8x8xf32>
    %cst_145 = arith.constant 0.000000e+00 : f32
    %192 = vector.broadcast %cst_145 : f32 to vector<8x8xf32>
    %193 = arith.maximumf %191, %192 : vector<8x8xf32>
    %c0_146 = arith.constant 0 : index
    %c7_147 = arith.constant 7 : index
    %194 = vector.load %arg11[%c0_146, %c7_147] : memref<8x22xf32, #tpu.memory_space<vmem>>, vector<8x8xf32>
    tpu.vector_store %arg11[%c0_146, %c7_147], %193 {strides = array<i32>} : memref<8x22xf32, #tpu.memory_space<vmem>>, vector<8x8xf32>,
    %c0_148 = arith.constant 0 : index
    %c0_149 = arith.constant 0 : index
    %195 = vector.load %arg11[%c0_148, %c0_149] : memref<8x22xf32, #tpu.memory_space<vmem>>, vector<8x8xf32>
    %c0_150 = arith.constant 0 : index
    %c0_151 = arith.constant 0 : index
    %196 = vector.load %arg12[%c0_150, %c0_151] : memref<120x8xf32, #tpu.memory_space<vmem>>, vector<8x8xf32>
    tpu.vector_store %arg12[%c0_150, %c0_151], %195 {strides = array<i32>} : memref<120x8xf32, #tpu.memory_space<vmem>>, vector<8x8xf32>,
    %c0_152 = arith.constant 0 : index
    %c1_153 = arith.constant 1 : index
    %197 = vector.load %arg11[%c0_152, %c1_153] : memref<8x22xf32, #tpu.memory_space<vmem>>, vector<8x8xf32>
    %c8_154 = arith.constant 8 : index
    %c0_155 = arith.constant 0 : index
    %198 = vector.load %arg12[%c8_154, %c0_155] : memref<120x8xf32, #tpu.memory_space<vmem>>, vector<8x8xf32>
    tpu.vector_store %arg12[%c8_154, %c0_155], %197 {strides = array<i32>} : memref<120x8xf32, #tpu.memory_space<vmem>>, vector<8x8xf32>,
    %c0_156 = arith.constant 0 : index
    %c2_157 = arith.constant 2 : index
    %199 = vector.load %arg11[%c0_156, %c2_157] : memref<8x22xf32, #tpu.memory_space<vmem>>, vector<8x8xf32>
    %c16_158 = arith.constant 16 : index
    %c0_159 = arith.constant 0 : index
    %200 = vector.load %arg12[%c16_158, %c0_159] : memref<120x8xf32, #tpu.memory_space<vmem>>, vector<8x8xf32>
    tpu.vector_store %arg12[%c16_158, %c0_159], %199 {strides = array<i32>} : memref<120x8xf32, #tpu.memory_space<vmem>>, vector<8x8xf32>,
    %c0_160 = arith.constant 0 : index
    %c3_161 = arith.constant 3 : index
    %201 = vector.load %arg11[%c0_160, %c3_161] : memref<8x22xf32, #tpu.memory_space<vmem>>, vector<8x8xf32>
    %c24_162 = arith.constant 24 : index
    %c0_163 = arith.constant 0 : index
    %202 = vector.load %arg12[%c24_162, %c0_163] : memref<120x8xf32, #tpu.memory_space<vmem>>, vector<8x8xf32>
    tpu.vector_store %arg12[%c24_162, %c0_163], %201 {strides = array<i32>} : memref<120x8xf32, #tpu.memory_space<vmem>>, vector<8x8xf32>,
    %c0_164 = arith.constant 0 : index
    %c4_165 = arith.constant 4 : index
    %203 = vector.load %arg11[%c0_164, %c4_165] : memref<8x22xf32, #tpu.memory_space<vmem>>, vector<8x8xf32>
    %c32_166 = arith.constant 32 : index
    %c0_167 = arith.constant 0 : index
    %204 = vector.load %arg12[%c32_166, %c0_167] : memref<120x8xf32, #tpu.memory_space<vmem>>, vector<8x8xf32>
    tpu.vector_store %arg12[%c32_166, %c0_167], %203 {strides = array<i32>} : memref<120x8xf32, #tpu.memory_space<vmem>>, vector<8x8xf32>,
    %c0_168 = arith.constant 0 : index
    %c5_169 = arith.constant 5 : index
    %205 = vector.load %arg11[%c0_168, %c5_169] : memref<8x22xf32, #tpu.memory_space<vmem>>, vector<8x8xf32>
    %c40_170 = arith.constant 40 : index
    %c0_171 = arith.constant 0 : index
    %206 = vector.load %arg12[%c40_170, %c0_171] : memref<120x8xf32, #tpu.memory_space<vmem>>, vector<8x8xf32>
    tpu.vector_store %arg12[%c40_170, %c0_171], %205 {strides = array<i32>} : memref<120x8xf32, #tpu.memory_space<vmem>>, vector<8x8xf32>,
    %c0_172 = arith.constant 0 : index
    %c6_173 = arith.constant 6 : index
    %207 = vector.load %arg11[%c0_172, %c6_173] : memref<8x22xf32, #tpu.memory_space<vmem>>, vector<8x8xf32>
    %c48_174 = arith.constant 48 : index
    %c0_175 = arith.constant 0 : index
    %208 = vector.load %arg12[%c48_174, %c0_175] : memref<120x8xf32, #tpu.memory_space<vmem>>, vector<8x8xf32>
    tpu.vector_store %arg12[%c48_174, %c0_175], %207 {strides = array<i32>} : memref<120x8xf32, #tpu.memory_space<vmem>>, vector<8x8xf32>,
    %c0_176 = arith.constant 0 : index
    %c7_177 = arith.constant 7 : index
    %209 = vector.load %arg11[%c0_176, %c7_177] : memref<8x22xf32, #tpu.memory_space<vmem>>, vector<8x8xf32>
    %c56_178 = arith.constant 56 : index
    %c0_179 = arith.constant 0 : index
    %210 = vector.load %arg12[%c56_178, %c0_179] : memref<120x8xf32, #tpu.memory_space<vmem>>, vector<8x8xf32>
    tpu.vector_store %arg12[%c56_178, %c0_179], %209 {strides = array<i32>} : memref<120x8xf32, #tpu.memory_space<vmem>>, vector<8x8xf32>,
    %c0_180 = arith.constant 0 : index
    %c8_181 = arith.constant 8 : index
    %211 = vector.load %arg11[%c0_180, %c8_181] : memref<8x22xf32, #tpu.memory_space<vmem>>, vector<8x8xf32>
    %c64_182 = arith.constant 64 : index
    %c0_183 = arith.constant 0 : index
    %212 = vector.load %arg12[%c64_182, %c0_183] : memref<120x8xf32, #tpu.memory_space<vmem>>, vector<8x8xf32>
    tpu.vector_store %arg12[%c64_182, %c0_183], %211 {strides = array<i32>} : memref<120x8xf32, #tpu.memory_space<vmem>>, vector<8x8xf32>,
    %c0_184 = arith.constant 0 : index
    %c9_185 = arith.constant 9 : index
    %213 = vector.load %arg11[%c0_184, %c9_185] : memref<8x22xf32, #tpu.memory_space<vmem>>, vector<8x8xf32>
    %c72_186 = arith.constant 72 : index
    %c0_187 = arith.constant 0 : index
    %214 = vector.load %arg12[%c72_186, %c0_187] : memref<120x8xf32, #tpu.memory_space<vmem>>, vector<8x8xf32>
    tpu.vector_store %arg12[%c72_186, %c0_187], %213 {strides = array<i32>} : memref<120x8xf32, #tpu.memory_space<vmem>>, vector<8x8xf32>,
    %c0_188 = arith.constant 0 : index
    %c10_189 = arith.constant 10 : index
    %215 = vector.load %arg11[%c0_188, %c10_189] : memref<8x22xf32, #tpu.memory_space<vmem>>, vector<8x8xf32>
    %c80_190 = arith.constant 80 : index
    %c0_191 = arith.constant 0 : index
    %216 = vector.load %arg12[%c80_190, %c0_191] : memref<120x8xf32, #tpu.memory_space<vmem>>, vector<8x8xf32>
    tpu.vector_store %arg12[%c80_190, %c0_191], %215 {strides = array<i32>} : memref<120x8xf32, #tpu.memory_space<vmem>>, vector<8x8xf32>,
    %c0_192 = arith.constant 0 : index
    %c11_193 = arith.constant 11 : index
    %217 = vector.load %arg11[%c0_192, %c11_193] : memref<8x22xf32, #tpu.memory_space<vmem>>, vector<8x8xf32>
    %c88_194 = arith.constant 88 : index
    %c0_195 = arith.constant 0 : index
    %218 = vector.load %arg12[%c88_194, %c0_195] : memref<120x8xf32, #tpu.memory_space<vmem>>, vector<8x8xf32>
    tpu.vector_store %arg12[%c88_194, %c0_195], %217 {strides = array<i32>} : memref<120x8xf32, #tpu.memory_space<vmem>>, vector<8x8xf32>,
    %c0_196 = arith.constant 0 : index
    %c12_197 = arith.constant 12 : index
    %219 = vector.load %arg11[%c0_196, %c12_197] : memref<8x22xf32, #tpu.memory_space<vmem>>, vector<8x8xf32>
    %c96_198 = arith.constant 96 : index
    %c0_199 = arith.constant 0 : index
    %220 = vector.load %arg12[%c96_198, %c0_199] : memref<120x8xf32, #tpu.memory_space<vmem>>, vector<8x8xf32>
    tpu.vector_store %arg12[%c96_198, %c0_199], %219 {strides = array<i32>} : memref<120x8xf32, #tpu.memory_space<vmem>>, vector<8x8xf32>,
    %c0_200 = arith.constant 0 : index
    %c13_201 = arith.constant 13 : index
    %221 = vector.load %arg11[%c0_200, %c13_201] : memref<8x22xf32, #tpu.memory_space<vmem>>, vector<8x8xf32>
    %c104_202 = arith.constant 104 : index
    %c0_203 = arith.constant 0 : index
    %222 = vector.load %arg12[%c104_202, %c0_203] : memref<120x8xf32, #tpu.memory_space<vmem>>, vector<8x8xf32>
    tpu.vector_store %arg12[%c104_202, %c0_203], %221 {strides = array<i32>} : memref<120x8xf32, #tpu.memory_space<vmem>>, vector<8x8xf32>,
    %c0_204 = arith.constant 0 : index
    %c14_205 = arith.constant 14 : index
    %223 = vector.load %arg11[%c0_204, %c14_205] : memref<8x22xf32, #tpu.memory_space<vmem>>, vector<8x8xf32>
    %c112_206 = arith.constant 112 : index
    %c0_207 = arith.constant 0 : index
    %224 = vector.load %arg12[%c112_206, %c0_207] : memref<120x8xf32, #tpu.memory_space<vmem>>, vector<8x8xf32>
    tpu.vector_store %arg12[%c112_206, %c0_207], %223 {strides = array<i32>} : memref<120x8xf32, #tpu.memory_space<vmem>>, vector<8x8xf32>,
    %c0_208 = arith.constant 0 : index
    %c0_209 = arith.constant 0 : index
    %225 = vector.load %arg5[%c0_208, %c0_209] : memref<8x120xf32, #tpu.memory_space<vmem>>, vector<8x120xf32>
    %c0_210 = arith.constant 0 : index
    %c0_211 = arith.constant 0 : index
    %226 = vector.load %arg12[%c0_210, %c0_211] : memref<120x8xf32, #tpu.memory_space<vmem>>, vector<120x8xf32>
    %cst_212 = arith.constant dense<0.000000e+00> : vector<8x8xf32>
    %227 = tpu.matmul %225, %226, %cst_212 {dimension_numbers = #tpu.dot_dimension_numbers<[1], [0], [0], [1], [0, 0, 1, 1], [], []>} : vector<8x120xf32>, vector<120x8xf32>, vector<8x8xf32> -> vector<8x8xf32>
    %c0_213 = arith.constant 0 : index
    %c0_214 = arith.constant 0 : index
    %228 = vector.load %arg6[%c0_213, %c0_214] : memref<8x1xf32, #tpu.memory_space<vmem>>, vector<8x1xf32>
    %229 = vector.broadcast %228 : vector<8x1xf32> to vector<8x8xf32>
    %230 = arith.addf %227, %229 : vector<8x8xf32>
    %231 = vector.extract_strided_slice %230 {offsets = [0, 0], sizes = [4, 8], strides = [1, 1]} : vector<8x8xf32> to vector<4x8xf32>
    %232 = arith.addf %231, %128 : vector<4x8xf32>
    %c1_215 = arith.constant 1 : index
    %c0_216 = arith.constant 0 : index
    %c0_217 = arith.constant 0 : index
    %233 = vector.load %arg9[%c1_215, %c0_216, %c0_217] : memref<2x8x8xf32, #tpu.memory_space<vmem>>, vector<1x4x8xf32>
    %234 = vector.shape_cast %233 : vector<1x4x8xf32> to vector<4x8xf32>
    %235 = vector.shape_cast %232 : vector<4x8xf32> to vector<1x4x8xf32>
    tpu.vector_store %arg9[%c1_215, %c0_216, %c0_217], %235 {strides = array<i32>} : memref<2x8x8xf32, #tpu.memory_space<vmem>>, vector<1x4x8xf32>,
    %236 = vector.extract_strided_slice %230 {offsets = [4, 0], sizes = [4, 8], strides = [1, 1]} : vector<8x8xf32> to vector<4x8xf32>
    %c1_218 = arith.constant 1 : index
    %c4_219 = arith.constant 4 : index
    %c0_220 = arith.constant 0 : index
    %237 = vector.load %arg9[%c1_218, %c4_219, %c0_220] : memref<2x8x8xf32, #tpu.memory_space<vmem>>, vector<1x4x8xf32>
    %238 = vector.shape_cast %237 : vector<1x4x8xf32> to vector<4x8xf32>
    %239 = vector.shape_cast %236 : vector<4x8xf32> to vector<1x4x8xf32>
    tpu.vector_store %arg9[%c1_218, %c4_219, %c0_220], %239 {strides = array<i32>} : memref<2x8x8xf32, #tpu.memory_space<vmem>>, vector<1x4x8xf32>,
    return
  }
  func.func @transform_0(%arg0: i32) -> (i32, i32, i32, i32) {
    %c0_i32 = arith.constant 0 : i32
    %c0_i32_0 = arith.constant 0 : i32
    %c0_i32_1 = arith.constant 0 : i32
    %c0_i32_2 = arith.constant 0 : i32
    return %arg0, %c0_i32, %c0_i32_0, %c0_i32_1 : i32, i32, i32, i32
  }
  func.func @transform_1(%arg0: i32) -> (i32, i32, i32) {
    %c0_i32 = arith.constant 0 : i32
    %c0_i32_0 = arith.constant 0 : i32
    %c0_i32_1 = arith.constant 0 : i32
    %c0_i32_2 = arith.constant 0 : i32
    return %c0_i32, %c0_i32_0, %c0_i32_1 : i32, i32, i32
  }
  func.func @transform_2(%arg0: i32) -> (i32, i32) {
    %c0_i32 = arith.constant 0 : i32
    %c0_i32_0 = arith.constant 0 : i32
    %c0_i32_1 = arith.constant 0 : i32
    return %c0_i32, %c0_i32_0 : i32, i32
  }
  func.func @transform_3(%arg0: i32) -> (i32, i32) {
    %c0_i32 = arith.constant 0 : i32
    %c0_i32_0 = arith.constant 0 : i32
    %c0_i32_1 = arith.constant 0 : i32
    return %c0_i32, %c0_i32_0 : i32, i32
  }
  func.func @transform_4(%arg0: i32) -> (i32, i32) {
    %c0_i32 = arith.constant 0 : i32
    %c0_i32_0 = arith.constant 0 : i32
    %c0_i32_1 = arith.constant 0 : i32
    return %c0_i32, %c0_i32_0 : i32, i32
  }
  func.func @transform_5(%arg0: i32) -> (i32, i32) {
    %c0_i32 = arith.constant 0 : i32
    %c0_i32_0 = arith.constant 0 : i32
    %c0_i32_1 = arith.constant 0 : i32
    return %c0_i32, %c0_i32_0 : i32, i32
  }
  func.func @transform_6(%arg0: i32) -> (i32, i32) {
    %c0_i32 = arith.constant 0 : i32
    %c0_i32_0 = arith.constant 0 : i32
    %c0_i32_1 = arith.constant 0 : i32
    return %c0_i32, %c0_i32_0 : i32, i32
  }
  func.func @transform_7(%arg0: i32) -> (i32, i32) {
    %c0_i32 = arith.constant 0 : i32
    %c0_i32_0 = arith.constant 0 : i32
    %c0_i32_1 = arith.constant 0 : i32
    return %c0_i32, %c0_i32_0 : i32, i32
  }
  func.func @transform_8(%arg0: i32) -> (i32, i32, i32) {
    %c0_i32 = arith.constant 0 : i32
    %c0_i32_0 = arith.constant 0 : i32
    %c0_i32_1 = arith.constant 0 : i32
    return %arg0, %c0_i32, %c0_i32_0 : i32, i32, i32
  }
}

</mosaic_0001>

<bundles_post_ra>
// kernel: tpu_custom_call.1
= control target key start
LH: loop header
LB: loop body
LE: loop exit
PB: predicated region body
PF: predicated region fallthrough
CT: control target
= control target key end

     0   :  { %13 = vsyncpa [#allocation6], 0  ;;  %s1356_s0 = inlined_call_operand.vmem [shape: f32[2,2,4,15], index: 0, kind: input, shape index: {}]   ;;  %s1357_s1 = inlined_call_operand.vmem [shape: f32[2,4,15], index: 1, kind: input, shape index: {}]   ;;  %s1358_s2 = inlined_call_operand.hbm [shape: f32[8,60], index: 2, kind: input, shape index: {}]   ;;  %s1359_s3 = inlined_call_operand.vmem [shape: f32[8,1], index: 3, kind: input, shape index: {}]   ;;  %s1360_s4 = inlined_call_operand.vmem [shape: f32[8,120], index: 4, kind: input, shape index: {}]   ;;  %s1361_s5 = inlined_call_operand.vmem [shape: f32[8,1], index: 5, kind: input, shape index: {}]   ;;  %s1362_s6 = inlined_call_operand.vmem [shape: f32[4,1], index: 6, kind: input, shape index: {}]   ;;  %s1363_s7 = inlined_call_operand.vmem [shape: f32[4,1], index: 7, kind: input, shape index: {}]   ;;  %s1364_s8 = inlined_call_operand.hbm [shape: f32[2,8,8], index: 8, kind: output, shape index: {}]  }
   0x1   :  { %14 = vsyncpa [#allocation7], 0  ;;  %s1042_s27 = smov [#allocation5]  }
   0x2   :  { %s25_s28 = sshll.u32 %s1042_s27, 4  ;;  %s26_s28 = int_to_ptr.vmem [resolvable:$true] %s25_s28 }
   0x3   :  { %s1006_s29 = scalar_lea.vmem %s26_s28, 128  ;;  %p1011_p1 = scmp.lt.s32.totalorder %s26_s28, %s26_s28 }
   0x4   :  { %p1007_p0 = scmp.ne.s32.totalorder %s26_s28, %s1006_s29  ;;  %p1012_p2 = scmp.lt.s32.totalorder %s1006_s29, %s1006_s29 }
   0x6   :  { %p1013_p3 = por %p1012_p2, %p1011_p1 }
   0x8   :  { %p1014_p4 = pnand %p1013_p3, %p1007_p0 }
   0xa   :  { %1017 = shalt.err (!%p1014_p4)
}
   0xb   :  { %28 = dma.hbm_to_vmem [thread:$0]  %s1358_s2, 128, %s26_s28, [#allocation6]  }
   0xc   :  { %1038 = dma.done.wait [#allocation6], 128  }
   0xd   :  { %1039 = vsyncadd [#allocation6], 4294967168  ;;  %v1043_v0 = vmov 0   ;;  %v53_v1 = vld [vmem:[%s1362_s6] sm:$0xf]  ;;  %v1044_v14 = vmov 0.0  }
   0xe   :  { %996 = vset.pattern.permute.xlu0 %v1043_v0  ;;  %997 = vset.pattern.permute.xlu1 %v1043_v0  ;;  %v431_v2 = vld [vmem:[%s1362_s6] sm:$0xf]  ;;  %v1132_v7 = vld [vmem:[%s1356_s0 + $0x4] sm:$0xf]  ;;  %v1137_v9 = vld [vmem:[%s1356_s0 + $0xc] sm:$0xf] }
   0xf   :  { %56 = vperm.xlu0 %996, %v53_v1   ;;  %434 = vperm.xlu1 %997, %v431_v2   ;;  %v61_v3 = vld [vmem:[%s1363_s7] sm:$0xf]  ;;  %v1142_v10 = vld [vmem:[%s1356_s0 + $0x8] sm:$0xf]  ;;  %v72_v20 = vld [vmem:[%s1357_s1 + $0x4] sm:$0xf] }
  0x10   :  { %v439_v4 = vld [vmem:[%s1363_s7] sm:$0xf]  ;;  %870 = vmatprep.subr.mxu0 %v1044_v14  ;;  %889 = vmatprep.subr.mxu1 %v1044_v14  ;;  %vm75_vm0 = vcmask 60416   ;;  %s1045_s26 = smov 122   ;;  %s1046_s27 = smov 121   ;;  %vm1052_vm1 = vmmov 0  }
  0x11   :  { %v1127_v6 = vld [vmem:[%s1356_s0] sm:$0xf]  ;;  %v450_v29 = vld [vmem:[%s1357_s1 + $0x4] sm:$0xf]  ;;  %s1047_s10 = smov 123   ;;  %s1048_s11 = smov 124   ;;  %886 = vmatprep.mubr.msk.f32.mxu0 %vm1052_vm1, %v1044_v14  ;;  %919 = vmatprep.mubr.msk.f32.mxu1 %vm1052_vm1, %v1044_v14 }
  0x12   :  { %v71_v19 = vld [vmem:[%s1357_s1] sm:$0xf]  ;;  %s1049_s12 = smov 125   ;;  %s1051_s13 = smov 127   ;;  %vm151_vm2 = vcmask 1043456   ;;  %vm147_vm3 = vcmask 490496  }
  0x13   :  { %64 = vperm.xlu0 %996, %v61_v3   ;;  %442 = vperm.xlu1 %997, %v439_v4   ;;  %v449_v31 = vld [vmem:[%s1357_s1] sm:$0xf]  ;;  %s1050_s1 = smov 126   ;;  %vm42_vm4 = vcmask 56320   ;;  %vm44_vm5 = vcmask 179320   ;;  %vm230_vm6 = vcmask 121912  }
  0x14   :  { %v518_v35 = vld [vmem:[%s1359_s3] sm:$0xff]  ;;  %43 = vst.msk [vmem:[#allocation3] sm:$0xff] %vm42_vm4, %v1044_v14  ;;  %s1053_s3 = smov 7   ;;  %vm233_vm7 = vcmask 64512   ;;  %s1054_s2 = smov 114   ;;  %vm341_vm8 = vcmask 982016  }
  0x15   :  { %v132_v61 = vld [vmem:[#allocation5] sm:$0xff]  ;;  %45 = vst.msk [vmem:[#allocation3] sm:$0xff] %vm44_vm5, %v1044_v14  ;;  %s1055_s16 = smov 115   ;;  %s1056_s17 = smov 116   ;;  %vm421_vm9 = vcmask 64516  }
  0x16   :  { %s1057_s18 = smov 117   ;;  %s1058_s19 = smov 118  }
  0x17   :  { %s1059_s6 = smov 119   ;;  %s1060_s20 = smov 120  }
  0x8a   :  { %v57_v5 = vpop.permute.xlu0 %56  ;;  %v435_v8 = vpop.permute.xlu1 %434 }
  0x8b   :  { %v59_v11 = vmul.f32 %v57_v5, %v1127_v6  ;;  %v60_v12 = vmul.f32 %v57_v5, %v1132_v7  ;;  %v438_v13 = vmul.f32 %v1137_v9, %v435_v8  ;;  %v437_v18 = vmul.f32 %v1142_v10, %v435_v8 }
  0x8e   :  { %v65_v15 = vpop.permute.xlu0 %64  ;;  %v443_v21 = vpop.permute.xlu1 %442 }
  0x8f   :  { %v67_v16 = vadd.f32 %v65_v15, %v59_v11  ;;  %v68_v17 = vadd.f32 %v65_v15, %v60_v12  ;;  %v446_v24 = vadd.f32 %v443_v21, %v438_v13  ;;  %v445_v27 = vadd.f32 %v443_v21, %v437_v18 }
  0x91   :  { %v69_v22 = vmax.f32 %v67_v16, 0.0  ;;  %v70_v23 = vmax.f32 %v68_v17, 0.0  ;;  %v448_v28 = vmax.f32 %v446_v24, 0.0  ;;  %v447_v30 = vmax.f32 %v445_v27, 0.0 }
  0x93   :  { %v73_v25 = vmul.f32 %v71_v19, %v69_v22  ;;  %v74_v26 = vmul.f32 %v72_v20, %v70_v23  ;;  %v452_v32 = vmul.f32 %v450_v29, %v448_v28  ;;  %v451_v33 = vmul.f32 %v449_v31, %v447_v30 }
  0x95   :  { %120 = vrot.lane.b32.xlu1 %v73_v25, %s1045_s26  ;;  %128 = vrot.lane.b32.xlu0 %v73_v25, %s1046_s27  ;;  %76 = vst.msk [vmem:[#allocation2] sm:$0xf] %vm75_vm0, %v73_v25  ;;  %77 = vst.msk [vmem:[#allocation2 + $0x4] sm:$0xf] %vm75_vm0, %v74_v26 }
  0x99   :  { %112 = vrot.lane.b32.xlu1 %v73_v25, %s1047_s10  ;;  %124 = vrot.lane.b32.xlu0 %v74_v26, %s1045_s26 }
  0x9c   :  { %v1168_v34 = vld [vmem:[#allocation2] sm:$0xff] }
  0x9d   :  { %104 = vrot.lane.b32.xlu1 %v73_v25, %s1048_s11  ;;  %116 = vrot.lane.b32.xlu0 %v74_v26, %s1047_s10  ;;  %453 = vst.msk [vmem:[#allocation2] sm:$0xf] %vm75_vm0, %v451_v33  ;;  %454 = vst.msk [vmem:[#allocation2 + $0x4] sm:$0xf] %vm75_vm0, %v452_v32 }
  0xa1   :  { %96 = vrot.lane.b32.xlu1 %v73_v25, %s1049_s12  ;;  %108 = vrot.lane.b32.xlu0 %v74_v26, %s1048_s11 }
  0xa4   :  { %v510_v18 = vld [vmem:[#allocation2] sm:$0xff] }
  0xa5   :  { %88 = vrot.lane.b32.xlu1 %v73_v25, %s1050_s1  ;;  %100 = vrot.lane.b32.xlu0 %v74_v26, %s1049_s12 }
  0xa9   :  { %79 = vrot.lane.b32.xlu1 %v73_v25, %s1051_s13  ;;  %92 = vrot.lane.b32.xlu0 %v74_v26, %s1050_s1 }
  0xad   :  { %505 = vrot.lane.b32.xlu1 %v451_v33, %s1046_s27  ;;  %84 = vrot.lane.b32.xlu0 %v74_v26, %s1051_s13 }
  0xb1   :  { %501 = vrot.lane.b32.xlu1 %v452_v32, %s1045_s26  ;;  %497 = vrot.lane.b32.xlu0 %v451_v33, %s1045_s26 }
  0xb5   :  { %493 = vrot.lane.b32.xlu1 %v452_v32, %s1047_s10  ;;  %489 = vrot.lane.b32.xlu0 %v451_v33, %s1047_s10 }
  0xb9   :  { %485 = vrot.lane.b32.xlu1 %v452_v32, %s1048_s11  ;;  %481 = vrot.lane.b32.xlu0 %v451_v33, %s1048_s11 }
  0xbd   :  { %477 = vrot.lane.b32.xlu1 %v452_v32, %s1049_s12  ;;  %473 = vrot.lane.b32.xlu0 %v451_v33, %s1049_s12 }
  0xc1   :  { %469 = vrot.lane.b32.xlu1 %v452_v32, %s1050_s1  ;;  %465 = vrot.lane.b32.xlu0 %v451_v33, %s1050_s1 }
  0xc5   :  { %461 = vrot.lane.b32.xlu1 %v452_v32, %s1051_s13  ;;  %456 = vrot.lane.b32.xlu0 %v451_v33, %s1051_s13 }
  0xc9   :  { %521 = vperm.xlu1 %997, %v518_v35   ;;  %144 = vperm.xlu0 %996, %v518_v35  }
 0x107   :  { %v121_v36 = vpop.permute.xlu1 %120  ;;  %v129_v37 = vpop.permute.xlu0 %128 }
 0x108   :  { %123 = vst.msk [vmem:[#allocation2 + $0x30] sm:$0xf] %vm75_vm0, %v121_v36  ;;  %131 = vst.msk [vmem:[#allocation2 + $0x38] sm:$0xf] %vm75_vm0, %v129_v37 }
 0x10b   :  { %v113_v38 = vpop.permute.xlu1 %112  ;;  %v125_v39 = vpop.permute.xlu0 %124 }
 0x10c   :  { %115 = vst.msk [vmem:[#allocation2 + $0x28] sm:$0xf] %vm75_vm0, %v113_v38  ;;  %127 = vst.msk [vmem:[#allocation2 + $0x34] sm:$0xf] %vm75_vm0, %v125_v39 }
 0x10f   :  { %v105_v40 = vpop.permute.xlu1 %104  ;;  %v117_v41 = vpop.permute.xlu0 %116  ;;  %v140_v42 = vld [vmem:[#allocation2 + $0x38] sm:$0xf] }
 0x110   :  { %107 = vst.msk [vmem:[#allocation2 + $0x20] sm:$0xf] %vm75_vm0, %v105_v40  ;;  %119 = vst.msk [vmem:[#allocation2 + $0x2c] sm:$0xf] %vm75_vm0, %v117_v41  ;;  %871 = vmatpush3.msk.msra.mxu0 %vm151_vm2, %v140_v42 }
 0x111   :  { %872 = vmatprep.subr.mxu0 %v1044_v14 }
 0x113   :  { %v97_v43 = vpop.permute.xlu1 %96  ;;  %v109_v44 = vpop.permute.xlu0 %108  ;;  %v139_v45 = vld [vmem:[#allocation2 + $0x30] sm:$0xff] }
 0x114   :  { %99 = vst.msk [vmem:[#allocation2 + $0x18] sm:$0xf] %vm75_vm0, %v97_v43  ;;  %111 = vst.msk [vmem:[#allocation2 + $0x24] sm:$0xf] %vm75_vm0, %v109_v44  ;;  %873 = vmatpush3.msra.mxu0 %v139_v45 }
 0x115   :  { %874 = vmatprep.subr.mxu0 %v1044_v14 }
 0x117   :  { %v89_v46 = vpop.permute.xlu1 %88  ;;  %v101_v47 = vpop.permute.xlu0 %100  ;;  %v138_v48 = vld [vmem:[#allocation2 + $0x28] sm:$0xff] }
 0x118   :  { %91 = vst.msk [vmem:[#allocation2 + $0x10] sm:$0xf] %vm75_vm0, %v89_v46  ;;  %103 = vst.msk [vmem:[#allocation2 + $0x1c] sm:$0xf] %vm75_vm0, %v101_v47  ;;  %875 = vmatpush3.msra.mxu0 %v138_v48 }
 0x119   :  { %876 = vmatprep.subr.mxu0 %v1044_v14 }
 0x11b   :  { %v80_v49 = vpop.permute.xlu1 %79  ;;  %v93_v50 = vpop.permute.xlu0 %92  ;;  %v137_v51 = vld [vmem:[#allocation2 + $0x20] sm:$0xff] }
 0x11c   :  { %82 = vst.msk [vmem:[#allocation2 + $0x8] sm:$0xf] %vm75_vm0, %v80_v49  ;;  %95 = vst.msk [vmem:[#allocation2 + $0x14] sm:$0xf] %vm75_vm0, %v93_v50  ;;  %877 = vmatpush3.msra.mxu0 %v137_v51 }
 0x11d   :  { %878 = vmatprep.subr.mxu0 %v1044_v14 }
 0x11f   :  { %v506_v52 = vpop.permute.xlu1 %505  ;;  %v85_v53 = vpop.permute.xlu0 %84  ;;  %v136_v54 = vld [vmem:[#allocation2 + $0x18] sm:$0xff] }
 0x120   :  { %508 = vst.msk [vmem:[#allocation2 + $0x38] sm:$0xf] %vm75_vm0, %v506_v52  ;;  %87 = vst.msk [vmem:[#allocation2 + $0xc] sm:$0xf] %vm75_vm0, %v85_v53  ;;  %879 = vmatpush3.msra.mxu0 %v136_v54 }
 0x121   :  { %880 = vmatprep.subr.mxu0 %v1044_v14 }
 0x123   :  { %v502_v55 = vpop.permute.xlu1 %501  ;;  %v498_v56 = vpop.permute.xlu0 %497  ;;  %v135_v57 = vld [vmem:[#allocation2 + $0x10] sm:$0xff] }
 0x124   :  { %504 = vst.msk [vmem:[#allocation2 + $0x34] sm:$0xf] %vm75_vm0, %v502_v55  ;;  %500 = vst.msk [vmem:[#allocation2 + $0x30] sm:$0xf] %vm75_vm0, %v498_v56  ;;  %881 = vmatpush3.msra.mxu0 %v135_v57 }
 0x125   :  { %882 = vmatprep.subr.mxu0 %v1044_v14 }
 0x127   :  { %v494_v58 = vpop.permute.xlu1 %493  ;;  %v490_v59 = vpop.permute.xlu0 %489  ;;  %v134_v60 = vld [vmem:[#allocation2 + $0x8] sm:$0xff]  ;;  %v517_v0 = vld [vmem:[#allocation2 + $0x38] sm:$0xf] }
 0x128   :  { %496 = vst.msk [vmem:[#allocation2 + $0x2c] sm:$0xf] %vm75_vm0, %v494_v58  ;;  %492 = vst.msk [vmem:[#allocation2 + $0x28] sm:$0xf] %vm75_vm0, %v490_v59  ;;  %883 = vmatpush3.msra.mxu0 %v134_v60 }
 0x129   :  { %884 = vmatprep.subr.mxu0 %v1044_v14 }
 0x12a   :  { %885 = vmatpush3.msra.mxu0 %v1168_v34  ;;  %v335_v34 = vld [vmem:[%s1361_s5] sm:$0xff] }
 0x12b   :  { %v486_v62 = vpop.permute.xlu1 %485  ;;  %v482_v63 = vpop.permute.xlu0 %481  ;;  %887 = vmatmul.mubr.msk.f32.vlgmr.msra.gmra.mxu0 %vm147_vm3, %v132_v61  ;;  %922 = vmatprep.subr.mxu0 %v1044_v14  ;;  %v516_v1 = vld [vmem:[#allocation2 + $0x30] sm:$0xff] }
 0x12c   :  { %488 = vst.msk [vmem:[#allocation2 + $0x24] sm:$0xf] %vm75_vm0, %v486_v62  ;;  %484 = vst.msk [vmem:[#allocation2 + $0x20] sm:$0xf] %vm75_vm0, %v482_v63  ;;  %923 = vmatpush3.msk.msra.mxu0 %vm151_vm2, %v517_v0  ;;  %938 = vmatprep.mubr.msk.f32.mxu0 %vm1052_vm1, %v1044_v14 }
 0x12d   :  { %924 = vmatprep.subr.mxu0 %v1044_v14 }
 0x12e   :  { %925 = vmatpush3.msra.mxu0 %v516_v1  ;;  %v1312_v1 = vld [vmem:[%s1360_s4] sm:$0xff]  ;;  %s1061_s4 = smov [#allocation8]  }
 0x12f   :  { %v478_v2 = vpop.permute.xlu1 %477  ;;  %v474_v3 = vpop.permute.xlu0 %473  ;;  %926 = vmatprep.subr.mxu0 %v1044_v14  ;;  %v515_v4 = vld [vmem:[#allocation2 + $0x28] sm:$0xff]  ;;  %s800_s23 = sshll.u32 %s1061_s4, 4  ;;  %s801_s23 = int_to_ptr.vmem [resolvable:$true] %s800_s23 }
 0x130   :  { %480 = vst.msk [vmem:[#allocation2 + $0x1c] sm:$0xf] %vm75_vm0, %v478_v2  ;;  %476 = vst.msk [vmem:[#allocation2 + $0x18] sm:$0xf] %vm75_vm0, %v474_v3  ;;  %927 = vmatpush3.msra.mxu0 %v515_v4  ;;  %s1018_s24 = scalar_lea.vmem %s801_s23, 256  ;;  %p1023_p6 = scmp.lt.s32.totalorder %s801_s23, %s801_s23 }
 0x131   :  { %928 = vmatprep.subr.mxu0 %v1044_v14  ;;  %p1019_p5 = scmp.ne.s32.totalorder %s801_s23, %s1018_s24  ;;  %p1024_p7 = scmp.lt.s32.totalorder %s1018_s24, %s1018_s24 }
 0x133   :  { %v470_v5 = vpop.permute.xlu1 %469  ;;  %v466_v8 = vpop.permute.xlu0 %465  ;;  %v514_v11 = vld [vmem:[#allocation2 + $0x20] sm:$0xff]  ;;  %p1025_p8 = por %p1024_p7, %p1023_p6 }
 0x134   :  { %472 = vst.msk [vmem:[#allocation2 + $0x14] sm:$0xf] %vm75_vm0, %v470_v5  ;;  %468 = vst.msk [vmem:[#allocation2 + $0x10] sm:$0xf] %vm75_vm0, %v466_v8  ;;  %929 = vmatpush3.msra.mxu0 %v514_v11 }
 0x135   :  { %930 = vmatprep.subr.mxu0 %v1044_v14  ;;  %p1026_p9 = pnand %p1025_p8, %p1019_p5 }
 0x137   :  { %v462_v12 = vpop.permute.xlu1 %461  ;;  %v457_v13 = vpop.permute.xlu0 %456  ;;  %v513_v15 = vld [vmem:[#allocation2 + $0x18] sm:$0xff] }
 0x138   :  { %464 = vst.msk [vmem:[#allocation2 + $0xc] sm:$0xf] %vm75_vm0, %v462_v12  ;;  %459 = vst.msk [vmem:[#allocation2 + $0x8] sm:$0xf] %vm75_vm0, %v457_v13  ;;  %931 = vmatpush3.msra.mxu0 %v513_v15 }
 0x139   :  { %932 = vmatprep.subr.mxu0 %v1044_v14 }
 0x13b   :  { %v512_v16 = vld [vmem:[#allocation2 + $0x10] sm:$0xff] }
 0x13c   :  { %933 = vmatpush3.msra.mxu0 %v512_v16 }
 0x13d   :  { %934 = vmatprep.subr.mxu0 %v1044_v14 }
 0x13f   :  { %v511_v17 = vld [vmem:[#allocation2 + $0x8] sm:$0xff] }
 0x140   :  { %935 = vmatpush3.msra.mxu0 %v511_v17 }
 0x141   :  { %936 = vmatprep.subr.mxu0 %v1044_v14 }
 0x142   :  { %937 = vmatpush3.msra.mxu0 %v510_v18 }
 0x143   :  { %939 = vmatmul.mubr.msk.f32.vlgmr.msra.gmra.mxu0 %vm147_vm3, %v132_v61 }
 0x144   :  { %v145_v19 = vpop.permute.xlu0 %144  ;;  %v522_v24 = vpop.permute.xlu1 %521 }
 0x1eb   :  { %v221_v20 = vpop.f32.mrf.mxu0 }
 0x1ec   :  { %v222_v21 = vadd.f32 %v221_v20, %v145_v19 }
 0x1ed   :  { %v888_v22 = vpop.f32.mrf.mxu0 }
 0x1ee   :  { %v225_v23 = vmax.f32 %v222_v21, 0.0 }
 0x1f0   :  { %227 = vrot.lane.b32.xlu0 %v225_v23, %s1053_s3 }
 0x203   :  { %v596_v25 = vpop.f32.mrf.mxu0 }
 0x204   :  { %v597_v26 = vadd.f32 %v596_v25, %v522_v24 }
 0x205   :  { %v940_v27 = vpop.f32.mrf.mxu0 }
 0x206   :  { %v600_v28 = vmax.f32 %v597_v26, 0.0 }
 0x208   :  { %602 = vrot.lane.b32.xlu1 %v600_v28, %s1053_s3 }
 0x262   :  { %v228_v29 = vpop.permute.xlu0 %227 }
 0x263   :  { %231 = vst.msk [vmem:[#allocation3] sm:$0xff] %vm230_vm6, %v228_v29 }
 0x26a   :  { %v232_v30 = vld [vmem:[#allocation3] sm:$0xff] }
 0x26b   :  { %315 = vrot.lane.b32.xlu0 %v232_v30, %s1054_s2  ;;  %309 = vrot.lane.b32.xlu1 %v232_v30, %s1055_s16  ;;  %234 = vst.msk [vmem:[#allocation4] sm:$0xff] %vm233_vm7, %v232_v30 }
 0x26f   :  { %303 = vrot.lane.b32.xlu0 %v232_v30, %s1056_s17  ;;  %297 = vrot.lane.b32.xlu1 %v232_v30, %s1057_s18 }
 0x272   :  { %v1259_v33 = vld [vmem:[#allocation4] sm:$0xff] }
 0x273   :  { %291 = vrot.lane.b32.xlu0 %v232_v30, %s1058_s19  ;;  %285 = vrot.lane.b32.xlu1 %v232_v30, %s1059_s6 }
 0x277   :  { %279 = vrot.lane.b32.xlu0 %v232_v30, %s1060_s20  ;;  %273 = vrot.lane.b32.xlu1 %v232_v30, %s1046_s27 }
 0x27a   :  { %v603_v31 = vpop.permute.xlu1 %602 }
 0x27b   :  { %267 = vrot.lane.b32.xlu0 %v232_v30, %s1045_s26  ;;  %261 = vrot.lane.b32.xlu1 %v232_v30, %s1047_s10  ;;  %605 = vst.msk [vmem:[#allocation3] sm:$0xff] %vm230_vm6, %v603_v31 }
 0x27f   :  { %255 = vrot.lane.b32.xlu0 %v232_v30, %s1048_s11  ;;  %249 = vrot.lane.b32.xlu1 %v232_v30, %s1049_s12 }
 0x282   :  { %v686_v32 = vld [vmem:[#allocation3] sm:$0xff] }
 0x283   :  { %243 = vrot.lane.b32.xlu0 %v232_v30, %s1050_s1  ;;  %237 = vrot.lane.b32.xlu1 %v232_v30, %s1051_s13  ;;  %607 = vst.msk [vmem:[#allocation4] sm:$0xff] %vm233_vm7, %v686_v32 }
 0x287   :  { %688 = vrot.lane.b32.xlu0 %v686_v32, %s1054_s2  ;;  %682 = vrot.lane.b32.xlu1 %v686_v32, %s1055_s16 }
 0x28b   :  { %676 = vrot.lane.b32.xlu0 %v686_v32, %s1056_s17  ;;  %670 = vrot.lane.b32.xlu1 %v686_v32, %s1057_s18 }
 0x28f   :  { %664 = vrot.lane.b32.xlu0 %v686_v32, %s1058_s19  ;;  %658 = vrot.lane.b32.xlu1 %v686_v32, %s1059_s6 }
 0x293   :  { %652 = vrot.lane.b32.xlu0 %v686_v32, %s1060_s20  ;;  %646 = vrot.lane.b32.xlu1 %v686_v32, %s1046_s27 }
 0x297   :  { %640 = vrot.lane.b32.xlu0 %v686_v32, %s1045_s26  ;;  %634 = vrot.lane.b32.xlu1 %v686_v32, %s1047_s10 }
 0x29b   :  { %628 = vrot.lane.b32.xlu0 %v686_v32, %s1048_s11  ;;  %622 = vrot.lane.b32.xlu1 %v686_v32, %s1049_s12 }
 0x29f   :  { %616 = vrot.lane.b32.xlu0 %v686_v32, %s1050_s1  ;;  %610 = vrot.lane.b32.xlu1 %v686_v32, %s1051_s13 }
 0x2a3   :  { %49 = vrot.lane.b32.xlu0 %v1127_v6, %s1051_s13  ;;  %427 = vrot.lane.b32.xlu1 %v1142_v10, %s1051_s13 }
 0x2a7   :  { %338 = vperm.xlu0 %996, %v335_v34   ;;  %711 = vperm.xlu1 %997, %v335_v34  }
 0x2dd   :  { %v316_v35 = vpop.permute.xlu0 %315  ;;  %v310_v36 = vpop.permute.xlu1 %309 }
 0x2de   :  { %318 = vst.msk [vmem:[#allocation4 + $0x70] sm:$0xff] %vm233_vm7, %v316_v35  ;;  %312 = vst.msk [vmem:[#allocation4 + $0x68] sm:$0xff] %vm233_vm7, %v310_v36 }
 0x2e1   :  { %v304_v37 = vpop.permute.xlu0 %303  ;;  %v298_v38 = vpop.permute.xlu1 %297 }
 0x2e2   :  { %306 = vst.msk [vmem:[#allocation4 + $0x60] sm:$0xff] %vm233_vm7, %v304_v37  ;;  %300 = vst.msk [vmem:[#allocation4 + $0x58] sm:$0xff] %vm233_vm7, %v298_v38 }
 0x2e5   :  { %v292_v6 = vpop.permute.xlu0 %291  ;;  %v286_v10 = vpop.permute.xlu1 %285  ;;  %v334_v39 = vld [vmem:[#allocation4 + $0x70] sm:$0xff]  ;;  %v333_v40 = vld [vmem:[#allocation4 + $0x68] sm:$0xff] }
 0x2e6   :  { %294 = vst.msk [vmem:[#allocation4 + $0x50] sm:$0xff] %vm233_vm7, %v292_v6  ;;  %288 = vst.msk [vmem:[#allocation4 + $0x48] sm:$0xff] %vm233_vm7, %v286_v10  ;;  %890 = vmatpush3.msra.mxu1 %v334_v39 }
 0x2e7   :  { %891 = vmatprep.subr.mxu1 %v1044_v14 }
 0x2e8   :  { %892 = vmatpush3.msra.mxu1 %v333_v40 }
 0x2e9   :  { %893 = vmatprep.subr.mxu1 %v1044_v14  ;;  %v280_v41 = vpop.permute.xlu0 %279  ;;  %v274_v42 = vpop.permute.xlu1 %273  ;;  %v332_v43 = vld [vmem:[#allocation4 + $0x60] sm:$0xff]  ;;  %v331_v44 = vld [vmem:[#allocation4 + $0x58] sm:$0xff] }
 0x2ea   :  { %282 = vst.msk [vmem:[#allocation4 + $0x40] sm:$0xff] %vm233_vm7, %v280_v41  ;;  %276 = vst.msk [vmem:[#allocation4 + $0x38] sm:$0xff] %vm233_vm7, %v274_v42  ;;  %894 = vmatpush3.msra.mxu1 %v332_v43 }
 0x2eb   :  { %895 = vmatprep.subr.mxu1 %v1044_v14 }
 0x2ec   :  { %896 = vmatpush3.msra.mxu1 %v331_v44 }
 0x2ed   :  { %897 = vmatprep.subr.mxu1 %v1044_v14  ;;  %v268_v45 = vpop.permute.xlu0 %267  ;;  %v262_v46 = vpop.permute.xlu1 %261  ;;  %v330_v47 = vld [vmem:[#allocation4 + $0x50] sm:$0xff]  ;;  %v329_v48 = vld [vmem:[#allocation4 + $0x48] sm:$0xff] }
 0x2ee   :  { %270 = vst.msk [vmem:[#allocation4 + $0x30] sm:$0xff] %vm233_vm7, %v268_v45  ;;  %264 = vst.msk [vmem:[#allocation4 + $0x28] sm:$0xff] %vm233_vm7, %v262_v46  ;;  %898 = vmatpush3.msra.mxu1 %v330_v47 }
 0x2ef   :  { %899 = vmatprep.subr.mxu1 %v1044_v14 }
 0x2f0   :  { %900 = vmatpush3.msra.mxu1 %v329_v48 }
 0x2f1   :  { %901 = vmatprep.subr.mxu1 %v1044_v14  ;;  %v256_v49 = vpop.permute.xlu0 %255  ;;  %v250_v50 = vpop.permute.xlu1 %249  ;;  %v328_v51 = vld [vmem:[#allocation4 + $0x40] sm:$0xff]  ;;  %v327_v52 = vld [vmem:[#allocation4 + $0x38] sm:$0xff] }
 0x2f2   :  { %258 = vst.msk [vmem:[#allocation4 + $0x20] sm:$0xff] %vm233_vm7, %v256_v49  ;;  %252 = vst.msk [vmem:[#allocation4 + $0x18] sm:$0xff] %vm233_vm7, %v250_v50  ;;  %902 = vmatpush3.msra.mxu1 %v328_v51 }
 0x2f3   :  { %903 = vmatprep.subr.mxu1 %v1044_v14 }
 0x2f4   :  { %904 = vmatpush3.msra.mxu1 %v327_v52 }
 0x2f5   :  { %905 = vmatprep.subr.mxu1 %v1044_v14  ;;  %v244_v53 = vpop.permute.xlu0 %243  ;;  %v238_v54 = vpop.permute.xlu1 %237  ;;  %v326_v55 = vld [vmem:[#allocation4 + $0x30] sm:$0xff]  ;;  %v325_v56 = vld [vmem:[#allocation4 + $0x28] sm:$0xff] }
 0x2f6   :  { %246 = vst.msk [vmem:[#allocation4 + $0x10] sm:$0xff] %vm233_vm7, %v244_v53  ;;  %240 = vst.msk [vmem:[#allocation4 + $0x8] sm:$0xff] %vm233_vm7, %v238_v54  ;;  %906 = vmatpush3.msra.mxu1 %v326_v55 }
 0x2f7   :  { %907 = vmatprep.subr.mxu1 %v1044_v14 }
 0x2f8   :  { %908 = vmatpush3.msra.mxu1 %v325_v56 }
 0x2f9   :  { %909 = vmatprep.subr.mxu1 %v1044_v14  ;;  %v689_v57 = vpop.permute.xlu0 %688  ;;  %v683_v58 = vpop.permute.xlu1 %682  ;;  %v324_v59 = vld [vmem:[#allocation4 + $0x20] sm:$0xff]  ;;  %v323_v60 = vld [vmem:[#allocation4 + $0x18] sm:$0xff] }
 0x2fa   :  { %691 = vst.msk [vmem:[#allocation4 + $0x70] sm:$0xff] %vm233_vm7, %v689_v57  ;;  %685 = vst.msk [vmem:[#allocation4 + $0x68] sm:$0xff] %vm233_vm7, %v683_v58  ;;  %910 = vmatpush3.msra.mxu1 %v324_v59 }
 0x2fb   :  { %911 = vmatprep.subr.mxu1 %v1044_v14 }
 0x2fc   :  { %912 = vmatpush3.msra.mxu1 %v323_v60 }
 0x2fd   :  { %913 = vmatprep.subr.mxu1 %v1044_v14  ;;  %v677_v61 = vpop.permute.xlu0 %676  ;;  %v671_v62 = vpop.permute.xlu1 %670  ;;  %v322_v63 = vld [vmem:[#allocation4 + $0x10] sm:$0xff]  ;;  %v321_v0 = vld [vmem:[#allocation4 + $0x8] sm:$0xff] }
 0x2fe   :  { %679 = vst.msk [vmem:[#allocation4 + $0x60] sm:$0xff] %vm233_vm7, %v677_v61  ;;  %673 = vst.msk [vmem:[#allocation4 + $0x58] sm:$0xff] %vm233_vm7, %v671_v62  ;;  %914 = vmatpush3.msra.mxu1 %v322_v63 }
 0x2ff   :  { %915 = vmatprep.subr.mxu1 %v1044_v14 }
 0x300   :  { %916 = vmatpush3.msra.mxu1 %v321_v0 }
 0x301   :  { %917 = vmatprep.subr.mxu1 %v1044_v14  ;;  %v665_v2 = vpop.permute.xlu0 %664  ;;  %v659_v3 = vpop.permute.xlu1 %658  ;;  %v707_v4 = vld [vmem:[#allocation4 + $0x70] sm:$0xff]  ;;  %v706_v11 = vld [vmem:[#allocation4 + $0x68] sm:$0xff] }
 0x302   :  { %667 = vst.msk [vmem:[#allocation4 + $0x50] sm:$0xff] %vm233_vm7, %v665_v2  ;;  %661 = vst.msk [vmem:[#allocation4 + $0x48] sm:$0xff] %vm233_vm7, %v659_v3  ;;  %918 = vmatpush3.msra.mxu1 %v1259_v33 }
 0x303   :  { %920 = vmatmul.mubr.msk.f32.vlgmr.msra.gmra.mxu1 %vm341_vm8, %v1312_v1  ;;  %941 = vmatprep.subr.mxu1 %v1044_v14 }
 0x304   :  { %942 = vmatpush3.msra.mxu1 %v707_v4  ;;  %971 = vmatprep.mubr.msk.f32.mxu1 %vm1052_vm1, %v1044_v14 }
 0x305   :  { %v653_v5 = vpop.permute.xlu0 %652  ;;  %v647_v8 = vpop.permute.xlu1 %646  ;;  %943 = vmatprep.subr.mxu1 %v1044_v14  ;;  %v705_v12 = vld [vmem:[#allocation4 + $0x60] sm:$0xff]  ;;  %v704_v16 = vld [vmem:[#allocation4 + $0x58] sm:$0xff] }
 0x306   :  { %655 = vst.msk [vmem:[#allocation4 + $0x40] sm:$0xff] %vm233_vm7, %v653_v5  ;;  %649 = vst.msk [vmem:[#allocation4 + $0x38] sm:$0xff] %vm233_vm7, %v647_v8  ;;  %944 = vmatpush3.msra.mxu1 %v706_v11 }
 0x307   :  { %945 = vmatprep.subr.mxu1 %v1044_v14 }
 0x308   :  { %946 = vmatpush3.msra.mxu1 %v705_v12 }
 0x309   :  { %v641_v13 = vpop.permute.xlu0 %640  ;;  %v635_v15 = vpop.permute.xlu1 %634  ;;  %947 = vmatprep.subr.mxu1 %v1044_v14  ;;  %v703_v17 = vld [vmem:[#allocation4 + $0x50] sm:$0xff]  ;;  %v702_v20 = vld [vmem:[#allocation4 + $0x48] sm:$0xff] }
 0x30a   :  { %643 = vst.msk [vmem:[#allocation4 + $0x30] sm:$0xff] %vm233_vm7, %v641_v13  ;;  %637 = vst.msk [vmem:[#allocation4 + $0x28] sm:$0xff] %vm233_vm7, %v635_v15  ;;  %948 = vmatpush3.msra.mxu1 %v704_v16 }
 0x30b   :  { %949 = vmatprep.subr.mxu1 %v1044_v14 }
 0x30c   :  { %950 = vmatpush3.msra.mxu1 %v703_v17 }
 0x30d   :  { %v629_v18 = vpop.permute.xlu0 %628  ;;  %v623_v19 = vpop.permute.xlu1 %622  ;;  %951 = vmatprep.subr.mxu1 %v1044_v14  ;;  %v701_v21 = vld [vmem:[#allocation4 + $0x40] sm:$0xff]  ;;  %v700_v24 = vld [vmem:[#allocation4 + $0x38] sm:$0xff] }
 0x30e   :  { %631 = vst.msk [vmem:[#allocation4 + $0x20] sm:$0xff] %vm233_vm7, %v629_v18  ;;  %625 = vst.msk [vmem:[#allocation4 + $0x18] sm:$0xff] %vm233_vm7, %v623_v19  ;;  %952 = vmatpush3.msra.mxu1 %v702_v20 }
 0x30f   :  { %953 = vmatprep.subr.mxu1 %v1044_v14 }
 0x310   :  { %954 = vmatpush3.msra.mxu1 %v701_v21 }
 0x311   :  { %v617_v22 = vpop.permute.xlu0 %616  ;;  %v611_v23 = vpop.permute.xlu1 %610  ;;  %955 = vmatprep.subr.mxu1 %v1044_v14  ;;  %v699_v25 = vld [vmem:[#allocation4 + $0x30] sm:$0xff]  ;;  %v698_v26 = vld [vmem:[#allocation4 + $0x28] sm:$0xff] }
 0x312   :  { %619 = vst.msk [vmem:[#allocation4 + $0x10] sm:$0xff] %vm233_vm7, %v617_v22  ;;  %613 = vst.msk [vmem:[#allocation4 + $0x8] sm:$0xff] %vm233_vm7, %v611_v23  ;;  %956 = vmatpush3.msra.mxu1 %v700_v24 }
 0x313   :  { %957 = vmatprep.subr.mxu1 %v1044_v14 }
 0x314   :  { %958 = vmatpush3.msra.mxu1 %v699_v25 }
 0x315   :  { %959 = vmatprep.subr.mxu1 %v1044_v14  ;;  %v50_v27 = vpop.permute.xlu0 %49  ;;  %v428_v28 = vpop.permute.xlu1 %427  ;;  %v697_v31 = vld [vmem:[#allocation4 + $0x20] sm:$0xff]  ;;  %v696_v32 = vld [vmem:[#allocation4 + $0x18] sm:$0xff] }
 0x316   :  { %960 = vmatpush3.msra.mxu1 %v698_v26  ;;  %v52_v29 = vmax.f32 %v1132_v7, %v50_v27  ;;  %v430_v30 = vmax.f32 %v1137_v9, %v428_v28  ;;  %v693_v9 = vld [vmem:[#allocation4] sm:$0xff] }
 0x317   :  { %961 = vmatprep.subr.mxu1 %v1044_v14 }
 0x318   :  { %962 = vmatpush3.msra.mxu1 %v697_v31  ;;  %416 = vrot.lane.b32.xlu0 %v52_v29, %s1049_s12 }
 0x319   :  { %963 = vmatprep.subr.mxu1 %v1044_v14  ;;  %788 = vrot.lane.b32.xlu1 %v430_v30, %s1049_s12  ;;  %v695_v33 = vld [vmem:[#allocation4 + $0x10] sm:$0xff]  ;;  %v694_v7 = vld [vmem:[#allocation4 + $0x8] sm:$0xff] }
 0x31a   :  { %964 = vmatpush3.msra.mxu1 %v696_v32 }
 0x31b   :  { %965 = vmatprep.subr.mxu1 %v1044_v14 }
 0x31c   :  { %966 = vmatpush3.msra.mxu1 %v695_v33 }
 0x31d   :  { %967 = vmatprep.subr.mxu1 %v1044_v14 }
 0x31e   :  { %968 = vmatpush3.msra.mxu1 %v694_v7 }
 0x31f   :  { %969 = vmatprep.subr.mxu1 %v1044_v14 }
 0x320   :  { %970 = vmatpush3.msra.mxu1 %v693_v9 }
 0x321   :  { %972 = vmatmul.mubr.msk.f32.vlgmr.msra.gmra.mxu1 %vm341_vm8, %v1312_v1 }
 0x322   :  { %v339_v34 = vpop.permute.xlu0 %338  ;;  %v712_v10 = vpop.permute.xlu1 %711 }
 0x38a   :  { %v417_v36 = vpop.permute.xlu0 %416 }
 0x38b   :  { %v789_v14 = vpop.permute.xlu1 %788 }
 0x3c3   :  { %v411_v35 = vpop.f32.mrf.mxu1 }
 0x3c4   :  { %v412_v37 = vadd.f32 %v411_v35, %v339_v34 }
 0x3c5   :  { %v921_v38 = vpop.f32.mrf.mxu1 }
 0x3c6   :  { %422 = vst.msk [vmem:[#allocation8] sm:$0xf0] %vm421_vm9, %v412_v37  ;;  %v419_v6 = vadd.f32 %v417_v36, %v412_v37 }
 0x3c8   :  { %420 = vst.msk [vmem:[#allocation8] sm:$0xf] %vm75_vm0, %v419_v6 }
 0x3e1   :  { %v783_v39 = vpop.f32.mrf.mxu1 }
 0x3e2   :  { %v784_v40 = vadd.f32 %v783_v39, %v712_v10 }
 0x3e3   :  { %v973_v41 = vpop.f32.mrf.mxu1 }
 0x3e4   :  { %794 = vst.msk [vmem:[#allocation8 + $0x8] sm:$0xf0] %vm421_vm9, %v784_v40  ;;  %v791_v42 = vadd.f32 %v789_v14, %v784_v40 }
 0x3e6   :  { %793 = vst.msk [vmem:[#allocation8 + $0x8] sm:$0xf] %vm75_vm0, %v791_v42 }
 0x3e7   :  { %1029 = shalt.err (!%p1026_p9)
}
 0x3e8   :  { %s1062_s0 = smov 128   ;;  %s1063_s25 = smov 8  }
 0x3e9   :  { %806 = dma.vmem_to_hbm [thread:$0]  %s801_s23, 256, %s1364_s8, [#allocation7], %s1062_s0, %s1062_s0, %s1063_s25  }
 0x3ea   :  { %1040 = dma.done.wait [#allocation7], 256  }
 0x3eb   :  { %1041 = vsyncadd [#allocation7], 4294967040 }
 0x3ec   :  { %810 = vsyncpa [#allocation6], 1 }
 0x3ed   :  { %811 = vsyncpa [#allocation7], 1 }

</bundles_post_ra>
